<compile_context>
chip_gen: v6e
topology: v6e:2x2x1
jax: 0.10.0
libtpu: 0.0.40
codegen_flags: <defaults>
</compile_context>

<pallas_src>
import functools

import jax
import jax.numpy as jnp
from jax.experimental import pallas as pl
from jax.experimental.pallas import tpu as pltpu


# ----------------------------------------------------------------------------
# Fused kernel: embedding + n_layers LSTM + final Linear, single invocation.
# Gate column order is [i, f, o, g] (reordered from PyTorch's [i, f, g, o]
# at init so sigmoid runs once over a contiguous 3H slab).
# ----------------------------------------------------------------------------
def _rnn_fused_kernel(n_layers, seq_len, batch, hidden_dim, *args):
    n_in = 4 + 3 * n_layers + 2
    in_refs = args[:n_in]
    logits_ref, hT_ref, cT_ref = args[n_in:n_in + 3]
    x_scr = args[n_in + 3]                       # (T*B, H) inter-layer buffer

    tok_ref = in_refs[0]                         # (T*B, 1) int32, time-major
    emb_ref = in_refs[1]                         # (V, E)    f32
    h0_ref = in_refs[2]                          # (L, B, H) f32
    c0_ref = in_refs[3]                          # (L, B, H) f32
    wx_refs = in_refs[4:4 + n_layers]            # each (in_dim, 4H)
    wh_refs = in_refs[4 + n_layers:4 + 2 * n_layers]       # each (H, 4H)
    b_refs = in_refs[4 + 2 * n_layers:4 + 3 * n_layers]    # each (1, 4H)
    wfc_ref = in_refs[4 + 3 * n_layers]          # (H, O)
    bfc_ref = in_refs[4 + 3 * n_layers + 1]      # (1, O)

    H = hidden_dim
    B = batch
    TB = seq_len * batch
    V = emb_ref.shape[0]

    # --- Hoisted, batched embedding gather (one one-hot MXU matmul for all
    # T*B tokens; entirely off the recurrent serial chain). -------------------
    # TODO(synk): for realistic vocab sizes keep the table in HBM
    # (memory_space=pl.ANY) and row-gather via DMA instead of a one-hot matmul.
    lane_ids = jax.lax.broadcasted_iota(jnp.int32, (TB, V), 1)
    onehot = jnp.where(lane_ids == tok_ref[...], 1.0, 0.0)           # (TB, V)
    x_all = jnp.dot(onehot, emb_ref[...],
                    preferred_element_type=jnp.float32)              # (TB, E)

    h_last = None
    for layer in range(n_layers):
        wx = wx_refs[layer][...]                 # (in_dim, 4H)
        wh = wh_refs[layer][...]                 # (H, 4H)
        b = b_refs[layer][...]                   # (1, 4H)

        inp = x_all if layer == 0 else x_scr[...]        # (TB, in_dim)

        # Hoisted input projection: all T steps in ONE matmul, bias folded in
        # here, so the time loop has no concat / broadcast / bias add.
        pre_all = jnp.dot(inp, wx,
                          preferred_element_type=jnp.float32) + b    # (TB, 4H)

        h = h0_ref[layer]                        # (B, H)
        c = c0_ref[layer]                        # (B, H)

        # TODO(synk): for long sequences (T > ~16) switch to
        # lax.fori_loop(..., unroll=4..8) (or a T-chunked "arbitrary" grid
        # axis) to bound trace size and vreg live ranges.
        for t in range(seq_len):
            gates = pre_all[t * B:(t + 1) * B, :] + jnp.dot(
                h, wh, preferred_element_type=jnp.float32)           # (B, 4H)
            ifo = jax.nn.sigmoid(gates[:, :3 * H])   # one EUP slab: [i | f | o]
            g = jnp.tanh(gates[:, 3 * H:])           # (B, H)
            c = ifo[:, H:2 * H] * c + ifo[:, :H] * g
            h = ifo[:, 2 * H:3 * H] * jnp.tanh(c)

            # Only layers that feed another layer store their output sequence
            # (kept in VMEM scratch; never materialized in HBM).
            if layer < n_layers - 1:
                x_scr[t * B:(t + 1) * B, :] = h

        # Final-state outputs written exactly once per layer.
        hT_ref[layer] = h
        cT_ref[layer] = c
        h_last = h

    # Dropout is identity in eval mode.  Final Linear fused on the last
    # layer's last time step (== fc(lstm_output)[:, -1, :]).
    logits_ref[...] = (jnp.dot(h_last, wfc_ref[...],
                               preferred_element_type=jnp.float32)
                       + bfc_ref[...])


def _full_block(shape):
    """Whole-array VMEM block for a grid=(1,) call."""
    return pl.BlockSpec(shape, lambda i: (0,) * len(shape))


# ----------------------------------------------------------------------------
# Forward pass (mirrors RNN.forward) — one fused pallas_call.
# ----------------------------------------------------------------------------
def rnn_forward(params, tokens, hidden, n_layers):
    assert n_layers >= 1, "n_layers must be >= 1"
    h0, c0 = hidden                                    # each (L, B, H)
    B, T = tokens.shape
    H = h0.shape[-1]
    O = params["w_fc"].shape[-1]

    # Time-major flattened token ids (T*B, 1): matches the row order of the
    # hoisted (T*B, ·) projections inside the kernel, no in-kernel reshapes.
    tok = jnp.transpose(tokens.astype(jnp.int32), (1, 0)).reshape(T * B, 1)

    inputs = ([tok, params["embedding"], h0, c0]
              + list(params["w_x"]) + list(params["w_h"]) + list(params["b"])
              + [params["w_fc"], params["b_fc"]])

    kernel = functools.partial(_rnn_fused_kernel, n_layers, T, B, H)

    # At these sizes everything fits trivially in VMEM on v5e/v6e/v7x.
    # TODO(synk): when scaling H / vocab / L, switch weights + x_scr to bf16,
    # set vmem_limit_bytes explicitly (v7x has only 64 MiB physical VMEM), and
    # add a leading "parallel" batch-tile grid axis to use v7x's 2 TensorCores.
    logits, hT, cT = pl.pallas_call(
        kernel,
        grid=(1,),
        in_specs=[_full_block(x.shape) for x in inputs],
        out_specs=[_full_block((B, O)),
                   _full_block((n_layers, B, H)),
                   _full_block((n_layers, B, H))],
        out_shape=[jax.ShapeDtypeStruct((B, O), jnp.float32),
                   jax.ShapeDtypeStruct((n_layers, B, H), jnp.float32),
                   jax.ShapeDtypeStruct((n_layers, B, H), jnp.float32)],
        scratch_shapes=[pltpu.VMEM((T * B, H), jnp.float32)],
        compiler_params=pltpu.CompilerParams(
            dimension_semantics=("arbitrary",)),
    )(*inputs)

    return logits, (hT, cT)


# ----------------------------------------------------------------------------
# Parameter construction (PyTorch-style init), weights split into W_x / W_h
# with gate columns reordered to [i, f, o, g] and biases pre-summed.
# ----------------------------------------------------------------------------
def init_params(key, vocab_size, output_size, embedding_dim, hidden_dim, n_layers):
    keys = jax.random.split(key, 3 + 4 * n_layers)
    H = hidden_dim
    k = 1.0 / jnp.sqrt(jnp.float32(H))

    params = {}
    params["embedding"] = jax.random.normal(
        keys[0], (vocab_size, embedding_dim), jnp.float32)

    def reorder(w):
        # PyTorch row order [i, f, g, o] -> kernel order [i, f, o, g].
        i, f, g, o = jnp.split(w, 4, axis=0)
        return jnp.concatenate([i, f, o, g], axis=0)

    wx_list, wh_list, b_list = [], [], []
    for l in range(n_layers):
        in_dim = embedding_dim if l == 0 else hidden_dim
        kw = keys[3 + 4 * l: 3 + 4 * (l + 1)]
        w_ih = jax.random.uniform(kw[0], (4 * H, in_dim), jnp.float32, -k, k)
        w_hh = jax.random.uniform(kw[1], (4 * H, H), jnp.float32, -k, k)
        b_ih = jax.random.uniform(kw[2], (4 * H,), jnp.float32, -k, k)
        b_hh = jax.random.uniform(kw[3], (4 * H,), jnp.float32, -k, k)
        wx_list.append(reorder(w_ih).T)                        # (in_dim, 4H)
        wh_list.append(reorder(w_hh).T)                        # (H, 4H)
        b_list.append(reorder((b_ih + b_hh)[:, None]).T)       # (1, 4H)
    params["w_x"] = wx_list
    params["w_h"] = wh_list
    params["b"] = b_list

    params["w_fc"] = jax.random.uniform(
        keys[1], (hidden_dim, output_size), jnp.float32, -k, k)
    params["b_fc"] = jax.random.uniform(
        keys[2], (1, output_size), jnp.float32, -k, k)
    return params


def init_hidden(n_layers, batch_size, hidden_dim):
    z = jnp.zeros((n_layers, batch_size, hidden_dim), jnp.float32)
    return (z, z)


# ----------------------------------------------------------------------------
# Pure-JAX reference (for numerical verification); same [i,f,o,g] gate order.
# ----------------------------------------------------------------------------
def rnn_reference(params, tokens, hidden, n_layers):
    h0, c0 = hidden
    H = h0.shape[-1]
    hp = jax.lax.Precision.HIGHEST
    x = jnp.take(params["embedding"], tokens, axis=0)   # (B, T, E)
    x = jnp.transpose(x, (1, 0, 2))                     # (T, B, E)
    h_out, c_out = [], []
    for l in range(n_layers):
        wx = params["w_x"][l]
        wh = params["w_h"][l]
        b = params["b"][l]

        def step(carry, x_t, wx=wx, wh=wh, b=b):
            h, c = carry
            g = (jnp.dot(x_t, wx, precision=hp)
                 + jnp.dot(h, wh, precision=hp) + b)
            i = jax.nn.sigmoid(g[:, :H])
            f = jax.nn.sigmoid(g[:, H:2 * H])
            o = jax.nn.sigmoid(g[:, 2 * H:3 * H])
            gg = jnp.tanh(g[:, 3 * H:])
            c_new = f * c + i * gg
            h_new = o * jnp.tanh(c_new)
            return (h_new, c_new), h_new

        (hT, cT), ys = jax.lax.scan(step, (h0[l], c0[l]), x)
        x = ys
        h_out.append(hT)
        c_out.append(cT)
    logits = jnp.dot(x[-1], params["w_fc"], precision=hp) + params["b_fc"]
    return logits, (jnp.stack(h_out), jnp.stack(c_out))


if __name__ == "__main__":
    vocab_size = 50
    output_size = 64
    embedding_dim = 32
    hidden_dim = 32
    n_layers = 2
    batch = 2
    seq = 8

    key = jax.random.PRNGKey(0)
    pkey, tkey, hkey, ckey = jax.random.split(key, 4)
    params = init_params(pkey, vocab_size, output_size,
                         embedding_dim, hidden_dim, n_layers)

    tokens = jax.random.randint(tkey, (batch, seq), 0, vocab_size, jnp.int32)
    hidden = (0.1 * jax.random.normal(hkey, (n_layers, batch, hidden_dim),
                                      jnp.float32),
              0.1 * jax.random.normal(ckey, (n_layers, batch, hidden_dim),
                                      jnp.float32))

    fwd = jax.jit(functools.partial(rnn_forward, n_layers=n_layers))
    final_layer, (h_out, c_out) = fwd(params, tokens, hidden)
    jax.block_until_ready((final_layer, h_out, c_out))

    assert final_layer.shape == (batch, output_size)
    assert h_out.shape == (n_layers, batch, hidden_dim)
    assert c_out.shape == (n_layers, batch, hidden_dim)

    ref_logits, (ref_h, ref_c) = rnn_reference(params, tokens, hidden, n_layers)
    tol = 1e-4
    assert float(jnp.max(jnp.abs(final_layer - ref_logits))) < tol
    assert float(jnp.max(jnp.abs(h_out - ref_h))) < tol
    assert float(jnp.max(jnp.abs(c_out - ref_c))) < tol

    print("KERNEL_OK")
</pallas_src>

<mosaic_0001>
module attributes {stable_mosaic.version = 11 : i64} {
  func.func @_rnn_fused_kernel(%arg0: i32, %arg1: memref<16x1xi32, #tpu.memory_space<vmem>>, %arg2: memref<50x32xf32, #tpu.memory_space<vmem>>, %arg3: memref<2x2x32xf32, #tpu.memory_space<vmem>>, %arg4: memref<2x2x32xf32, #tpu.memory_space<vmem>>, %arg5: memref<32x128xf32, #tpu.memory_space<vmem>>, %arg6: memref<32x128xf32, #tpu.memory_space<vmem>>, %arg7: memref<32x128xf32, #tpu.memory_space<vmem>>, %arg8: memref<32x128xf32, #tpu.memory_space<vmem>>, %arg9: memref<1x128xf32, #tpu.memory_space<vmem>>, %arg10: memref<1x128xf32, #tpu.memory_space<vmem>>, %arg11: memref<32x64xf32, #tpu.memory_space<vmem>>, %arg12: memref<1x64xf32, #tpu.memory_space<vmem>>, %arg13: memref<2x64xf32, #tpu.memory_space<vmem>>, %arg14: memref<2x2x32xf32, #tpu.memory_space<vmem>>, %arg15: memref<2x2x32xf32, #tpu.memory_space<vmem>>, %arg16: memref<16x32xf32, #tpu.memory_space<vmem>>) attributes {dimension_semantics = [#tpu.dimension_semantics<arbitrary>], iteration_bounds = array<i64: 1>, scalar_prefetch = 0 : i64, scratch_operands = 1 : i64, tpu.core_type = #tpu.core_type<tc>, window_params = [{pipeline_mode = #tpu.pipeline_mode<synchronous>, transform_indices = @transform_0, window_bounds = array<i64: 16, 1>}, {pipeline_mode = #tpu.pipeline_mode<synchronous>, transform_indices = @transform_1, window_bounds = array<i64: 50, 32>}, {pipeline_mode = #tpu.pipeline_mode<synchronous>, transform_indices = @transform_2, window_bounds = array<i64: 2, 2, 32>}, {pipeline_mode = #tpu.pipeline_mode<synchronous>, transform_indices = @transform_3, window_bounds = array<i64: 2, 2, 32>}, {pipeline_mode = #tpu.pipeline_mode<synchronous>, transform_indices = @transform_4, window_bounds = array<i64: 32, 128>}, {pipeline_mode = #tpu.pipeline_mode<synchronous>, transform_indices = @transform_5, window_bounds = array<i64: 32, 128>}, {pipeline_mode = #tpu.pipeline_mode<synchronous>, transform_indices = @transform_6, window_bounds = array<i64: 32, 128>}, {pipeline_mode = #tpu.pipeline_mode<synchronous>, transform_indices = @transform_7, window_bounds = array<i64: 32, 128>}, {pipeline_mode = #tpu.pipeline_mode<synchronous>, transform_indices = @transform_8, window_bounds = array<i64: 1, 128>}, {pipeline_mode = #tpu.pipeline_mode<synchronous>, transform_indices = @transform_9, window_bounds = array<i64: 1, 128>}, {pipeline_mode = #tpu.pipeline_mode<synchronous>, transform_indices = @transform_10, window_bounds = array<i64: 32, 64>}, {pipeline_mode = #tpu.pipeline_mode<synchronous>, transform_indices = @transform_11, window_bounds = array<i64: 1, 64>}, {pipeline_mode = #tpu.pipeline_mode<synchronous>, transform_indices = @transform_12, window_bounds = array<i64: 2, 64>}, {pipeline_mode = #tpu.pipeline_mode<synchronous>, transform_indices = @transform_13, window_bounds = array<i64: 2, 2, 32>}, {pipeline_mode = #tpu.pipeline_mode<synchronous>, transform_indices = @transform_14, window_bounds = array<i64: 2, 2, 32>}]} {
    %0 = tpu.iota {dimensions = array<i32: 1>} : vector<16x50xi32>
    %c0 = arith.constant 0 : index
    %c0_0 = arith.constant 0 : index
    %1 = vector.load %arg1[%c0, %c0_0] : memref<16x1xi32, #tpu.memory_space<vmem>>, vector<16x1xi32>
    %2 = vector.broadcast %1 : vector<16x1xi32> to vector<16x50xi32>
    %3 = arith.cmpi eq, %0, %2 : vector<16x50xi32>
    %cst = arith.constant 1.000000e+00 : f32
    %cst_1 = arith.constant 0.000000e+00 : f32
    %4 = vector.broadcast %cst : f32 to vector<16x50xf32>
    %5 = vector.broadcast %cst_1 : f32 to vector<16x50xf32>
    %6 = arith.select %3, %4, %5 : vector<16x50xi1>, vector<16x50xf32>
    %c0_2 = arith.constant 0 : index
    %c0_3 = arith.constant 0 : index
    %7 = vector.load %arg2[%c0_2, %c0_3] : memref<50x32xf32, #tpu.memory_space<vmem>>, vector<50x32xf32>
    %cst_4 = arith.constant dense<0.000000e+00> : vector<16x32xf32>
    %8 = tpu.matmul %6, %7, %cst_4 {dimension_numbers = #tpu.dot_dimension_numbers<[1], [0], [0], [1], [0, 0, 1, 1], [], []>} : vector<16x50xf32>, vector<50x32xf32>, vector<16x32xf32> -> vector<16x32xf32>
    %c0_5 = arith.constant 0 : index
    %c0_6 = arith.constant 0 : index
    %9 = vector.load %arg5[%c0_5, %c0_6] : memref<32x128xf32, #tpu.memory_space<vmem>>, vector<32x128xf32>
    %c0_7 = arith.constant 0 : index
    %c0_8 = arith.constant 0 : index
    %10 = vector.load %arg7[%c0_7, %c0_8] : memref<32x128xf32, #tpu.memory_space<vmem>>, vector<32x128xf32>
    %c0_9 = arith.constant 0 : index
    %c0_10 = arith.constant 0 : index
    %11 = vector.load %arg9[%c0_9, %c0_10] : memref<1x128xf32, #tpu.memory_space<vmem>>, vector<1x128xf32>
    %cst_11 = arith.constant dense<0.000000e+00> : vector<16x128xf32>
    %12 = tpu.matmul %8, %9, %cst_11 {dimension_numbers = #tpu.dot_dimension_numbers<[1], [0], [0], [1], [0, 0, 1, 1], [], []>} : vector<16x32xf32>, vector<32x128xf32>, vector<16x128xf32> -> vector<16x128xf32>
    %13 = vector.broadcast %11 : vector<1x128xf32> to vector<16x128xf32>
    %14 = arith.addf %12, %13 : vector<16x128xf32>
    %c0_12 = arith.constant 0 : index
    %c0_13 = arith.constant 0 : index
    %c0_14 = arith.constant 0 : index
    %15 = vector.load %arg3[%c0_12, %c0_13, %c0_14] : memref<2x2x32xf32, #tpu.memory_space<vmem>>, vector<1x2x32xf32>
    %16 = vector.shape_cast %15 : vector<1x2x32xf32> to vector<2x32xf32>
    %c0_15 = arith.constant 0 : index
    %c0_16 = arith.constant 0 : index
    %c0_17 = arith.constant 0 : index
    %17 = vector.load %arg4[%c0_15, %c0_16, %c0_17] : memref<2x2x32xf32, #tpu.memory_space<vmem>>, vector<1x2x32xf32>
    %18 = vector.shape_cast %17 : vector<1x2x32xf32> to vector<2x32xf32>
    %19 = vector.extract_strided_slice %14 {offsets = [0, 0], sizes = [2, 128], strides = [1, 1]} : vector<16x128xf32> to vector<2x128xf32>
    %cst_18 = arith.constant dense<0.000000e+00> : vector<2x128xf32>
    %20 = tpu.matmul %16, %10, %cst_18 {dimension_numbers = #tpu.dot_dimension_numbers<[1], [0], [0], [1], [0, 0, 1, 1], [], []>} : vector<2x32xf32>, vector<32x128xf32>, vector<2x128xf32> -> vector<2x128xf32>
    %21 = arith.addf %19, %20 : vector<2x128xf32>
    %22 = vector.extract_strided_slice %21 {offsets = [0, 0], sizes = [2, 96], strides = [1, 1]} : vector<2x128xf32> to vector<2x96xf32>
    %23 = arith.negf %22 : vector<2x96xf32>
    %24 = math.exp %23 : vector<2x96xf32>
    %cst_19 = arith.constant 1.000000e+00 : f32
    %25 = vector.broadcast %cst_19 : f32 to vector<2x96xf32>
    %26 = arith.addf %25, %24 : vector<2x96xf32>
    %27 = arith.divf %25, %26 : vector<2x96xf32>
    %28 = vector.extract_strided_slice %21 {offsets = [0, 96], sizes = [2, 32], strides = [1, 1]} : vector<2x128xf32> to vector<2x32xf32>
    %29 = math.tanh %28 : vector<2x32xf32>
    %30 = vector.extract_strided_slice %27 {offsets = [0, 32], sizes = [2, 32], strides = [1, 1]} : vector<2x96xf32> to vector<2x32xf32>
    %31 = arith.mulf %30, %18 : vector<2x32xf32>
    %32 = vector.extract_strided_slice %27 {offsets = [0, 0], sizes = [2, 32], strides = [1, 1]} : vector<2x96xf32> to vector<2x32xf32>
    %33 = arith.mulf %32, %29 : vector<2x32xf32>
    %34 = arith.addf %31, %33 : vector<2x32xf32>
    %35 = vector.extract_strided_slice %27 {offsets = [0, 64], sizes = [2, 32], strides = [1, 1]} : vector<2x96xf32> to vector<2x32xf32>
    %36 = math.tanh %34 : vector<2x32xf32>
    %37 = arith.mulf %35, %36 : vector<2x32xf32>
    %c0_20 = arith.constant 0 : index
    %c0_21 = arith.constant 0 : index
    %38 = vector.load %arg16[%c0_20, %c0_21] : memref<16x32xf32, #tpu.memory_space<vmem>>, vector<2x32xf32>
    tpu.vector_store %arg16[%c0_20, %c0_21], %37 {strides = array<i32>} : memref<16x32xf32, #tpu.memory_space<vmem>>, vector<2x32xf32>,
    %39 = vector.extract_strided_slice %14 {offsets = [2, 0], sizes = [2, 128], strides = [1, 1]} : vector<16x128xf32> to vector<2x128xf32>
    %cst_22 = arith.constant dense<0.000000e+00> : vector<2x128xf32>
    %40 = tpu.matmul %37, %10, %cst_22 {dimension_numbers = #tpu.dot_dimension_numbers<[1], [0], [0], [1], [0, 0, 1, 1], [], []>} : vector<2x32xf32>, vector<32x128xf32>, vector<2x128xf32> -> vector<2x128xf32>
    %41 = arith.addf %39, %40 : vector<2x128xf32>
    %42 = vector.extract_strided_slice %41 {offsets = [0, 0], sizes = [2, 96], strides = [1, 1]} : vector<2x128xf32> to vector<2x96xf32>
    %43 = arith.negf %42 : vector<2x96xf32>
    %44 = math.exp %43 : vector<2x96xf32>
    %cst_23 = arith.constant 1.000000e+00 : f32
    %45 = vector.broadcast %cst_23 : f32 to vector<2x96xf32>
    %46 = arith.addf %45, %44 : vector<2x96xf32>
    %47 = arith.divf %45, %46 : vector<2x96xf32>
    %48 = vector.extract_strided_slice %41 {offsets = [0, 96], sizes = [2, 32], strides = [1, 1]} : vector<2x128xf32> to vector<2x32xf32>
    %49 = math.tanh %48 : vector<2x32xf32>
    %50 = vector.extract_strided_slice %47 {offsets = [0, 32], sizes = [2, 32], strides = [1, 1]} : vector<2x96xf32> to vector<2x32xf32>
    %51 = arith.mulf %50, %34 : vector<2x32xf32>
    %52 = vector.extract_strided_slice %47 {offsets = [0, 0], sizes = [2, 32], strides = [1, 1]} : vector<2x96xf32> to vector<2x32xf32>
    %53 = arith.mulf %52, %49 : vector<2x32xf32>
    %54 = arith.addf %51, %53 : vector<2x32xf32>
    %55 = vector.extract_strided_slice %47 {offsets = [0, 64], sizes = [2, 32], strides = [1, 1]} : vector<2x96xf32> to vector<2x32xf32>
    %56 = math.tanh %54 : vector<2x32xf32>
    %57 = arith.mulf %55, %56 : vector<2x32xf32>
    %c2 = arith.constant 2 : index
    %c0_24 = arith.constant 0 : index
    %58 = vector.load %arg16[%c2, %c0_24] : memref<16x32xf32, #tpu.memory_space<vmem>>, vector<2x32xf32>
    tpu.vector_store %arg16[%c2, %c0_24], %57 {strides = array<i32>} : memref<16x32xf32, #tpu.memory_space<vmem>>, vector<2x32xf32>,
    %59 = vector.extract_strided_slice %14 {offsets = [4, 0], sizes = [2, 128], strides = [1, 1]} : vector<16x128xf32> to vector<2x128xf32>
    %cst_25 = arith.constant dense<0.000000e+00> : vector<2x128xf32>
    %60 = tpu.matmul %57, %10, %cst_25 {dimension_numbers = #tpu.dot_dimension_numbers<[1], [0], [0], [1], [0, 0, 1, 1], [], []>} : vector<2x32xf32>, vector<32x128xf32>, vector<2x128xf32> -> vector<2x128xf32>
    %61 = arith.addf %59, %60 : vector<2x128xf32>
    %62 = vector.extract_strided_slice %61 {offsets = [0, 0], sizes = [2, 96], strides = [1, 1]} : vector<2x128xf32> to vector<2x96xf32>
    %63 = arith.negf %62 : vector<2x96xf32>
    %64 = math.exp %63 : vector<2x96xf32>
    %cst_26 = arith.constant 1.000000e+00 : f32
    %65 = vector.broadcast %cst_26 : f32 to vector<2x96xf32>
    %66 = arith.addf %65, %64 : vector<2x96xf32>
    %67 = arith.divf %65, %66 : vector<2x96xf32>
    %68 = vector.extract_strided_slice %61 {offsets = [0, 96], sizes = [2, 32], strides = [1, 1]} : vector<2x128xf32> to vector<2x32xf32>
    %69 = math.tanh %68 : vector<2x32xf32>
    %70 = vector.extract_strided_slice %67 {offsets = [0, 32], sizes = [2, 32], strides = [1, 1]} : vector<2x96xf32> to vector<2x32xf32>
    %71 = arith.mulf %70, %54 : vector<2x32xf32>
    %72 = vector.extract_strided_slice %67 {offsets = [0, 0], sizes = [2, 32], strides = [1, 1]} : vector<2x96xf32> to vector<2x32xf32>
    %73 = arith.mulf %72, %69 : vector<2x32xf32>
    %74 = arith.addf %71, %73 : vector<2x32xf32>
    %75 = vector.extract_strided_slice %67 {offsets = [0, 64], sizes = [2, 32], strides = [1, 1]} : vector<2x96xf32> to vector<2x32xf32>
    %76 = math.tanh %74 : vector<2x32xf32>
    %77 = arith.mulf %75, %76 : vector<2x32xf32>
    %c4 = arith.constant 4 : index
    %c0_27 = arith.constant 0 : index
    %78 = vector.load %arg16[%c4, %c0_27] : memref<16x32xf32, #tpu.memory_space<vmem>>, vector<2x32xf32>
    tpu.vector_store %arg16[%c4, %c0_27], %77 {strides = array<i32>} : memref<16x32xf32, #tpu.memory_space<vmem>>, vector<2x32xf32>,
    %79 = vector.extract_strided_slice %14 {offsets = [6, 0], sizes = [2, 128], strides = [1, 1]} : vector<16x128xf32> to vector<2x128xf32>
    %cst_28 = arith.constant dense<0.000000e+00> : vector<2x128xf32>
    %80 = tpu.matmul %77, %10, %cst_28 {dimension_numbers = #tpu.dot_dimension_numbers<[1], [0], [0], [1], [0, 0, 1, 1], [], []>} : vector<2x32xf32>, vector<32x128xf32>, vector<2x128xf32> -> vector<2x128xf32>
    %81 = arith.addf %79, %80 : vector<2x128xf32>
    %82 = vector.extract_strided_slice %81 {offsets = [0, 0], sizes = [2, 96], strides = [1, 1]} : vector<2x128xf32> to vector<2x96xf32>
    %83 = arith.negf %82 : vector<2x96xf32>
    %84 = math.exp %83 : vector<2x96xf32>
    %cst_29 = arith.constant 1.000000e+00 : f32
    %85 = vector.broadcast %cst_29 : f32 to vector<2x96xf32>
    %86 = arith.addf %85, %84 : vector<2x96xf32>
    %87 = arith.divf %85, %86 : vector<2x96xf32>
    %88 = vector.extract_strided_slice %81 {offsets = [0, 96], sizes = [2, 32], strides = [1, 1]} : vector<2x128xf32> to vector<2x32xf32>
    %89 = math.tanh %88 : vector<2x32xf32>
    %90 = vector.extract_strided_slice %87 {offsets = [0, 32], sizes = [2, 32], strides = [1, 1]} : vector<2x96xf32> to vector<2x32xf32>
    %91 = arith.mulf %90, %74 : vector<2x32xf32>
    %92 = vector.extract_strided_slice %87 {offsets = [0, 0], sizes = [2, 32], strides = [1, 1]} : vector<2x96xf32> to vector<2x32xf32>
    %93 = arith.mulf %92, %89 : vector<2x32xf32>
    %94 = arith.addf %91, %93 : vector<2x32xf32>
    %95 = vector.extract_strided_slice %87 {offsets = [0, 64], sizes = [2, 32], strides = [1, 1]} : vector<2x96xf32> to vector<2x32xf32>
    %96 = math.tanh %94 : vector<2x32xf32>
    %97 = arith.mulf %95, %96 : vector<2x32xf32>
    %c6 = arith.constant 6 : index
    %c0_30 = arith.constant 0 : index
    %98 = vector.load %arg16[%c6, %c0_30] : memref<16x32xf32, #tpu.memory_space<vmem>>, vector<2x32xf32>
    tpu.vector_store %arg16[%c6, %c0_30], %97 {strides = array<i32>} : memref<16x32xf32, #tpu.memory_space<vmem>>, vector<2x32xf32>,
    %99 = vector.extract_strided_slice %14 {offsets = [8, 0], sizes = [2, 128], strides = [1, 1]} : vector<16x128xf32> to vector<2x128xf32>
    %cst_31 = arith.constant dense<0.000000e+00> : vector<2x128xf32>
    %100 = tpu.matmul %97, %10, %cst_31 {dimension_numbers = #tpu.dot_dimension_numbers<[1], [0], [0], [1], [0, 0, 1, 1], [], []>} : vector<2x32xf32>, vector<32x128xf32>, vector<2x128xf32> -> vector<2x128xf32>
    %101 = arith.addf %99, %100 : vector<2x128xf32>
    %102 = vector.extract_strided_slice %101 {offsets = [0, 0], sizes = [2, 96], strides = [1, 1]} : vector<2x128xf32> to vector<2x96xf32>
    %103 = arith.negf %102 : vector<2x96xf32>
    %104 = math.exp %103 : vector<2x96xf32>
    %cst_32 = arith.constant 1.000000e+00 : f32
    %105 = vector.broadcast %cst_32 : f32 to vector<2x96xf32>
    %106 = arith.addf %105, %104 : vector<2x96xf32>
    %107 = arith.divf %105, %106 : vector<2x96xf32>
    %108 = vector.extract_strided_slice %101 {offsets = [0, 96], sizes = [2, 32], strides = [1, 1]} : vector<2x128xf32> to vector<2x32xf32>
    %109 = math.tanh %108 : vector<2x32xf32>
    %110 = vector.extract_strided_slice %107 {offsets = [0, 32], sizes = [2, 32], strides = [1, 1]} : vector<2x96xf32> to vector<2x32xf32>
    %111 = arith.mulf %110, %94 : vector<2x32xf32>
    %112 = vector.extract_strided_slice %107 {offsets = [0, 0], sizes = [2, 32], strides = [1, 1]} : vector<2x96xf32> to vector<2x32xf32>
    %113 = arith.mulf %112, %109 : vector<2x32xf32>
    %114 = arith.addf %111, %113 : vector<2x32xf32>
    %115 = vector.extract_strided_slice %107 {offsets = [0, 64], sizes = [2, 32], strides = [1, 1]} : vector<2x96xf32> to vector<2x32xf32>
    %116 = math.tanh %114 : vector<2x32xf32>
    %117 = arith.mulf %115, %116 : vector<2x32xf32>
    %c8 = arith.constant 8 : index
    %c0_33 = arith.constant 0 : index
    %118 = vector.load %arg16[%c8, %c0_33] : memref<16x32xf32, #tpu.memory_space<vmem>>, vector<2x32xf32>
    tpu.vector_store %arg16[%c8, %c0_33], %117 {strides = array<i32>} : memref<16x32xf32, #tpu.memory_space<vmem>>, vector<2x32xf32>,
    %119 = vector.extract_strided_slice %14 {offsets = [10, 0], sizes = [2, 128], strides = [1, 1]} : vector<16x128xf32> to vector<2x128xf32>
    %cst_34 = arith.constant dense<0.000000e+00> : vector<2x128xf32>
    %120 = tpu.matmul %117, %10, %cst_34 {dimension_numbers = #tpu.dot_dimension_numbers<[1], [0], [0], [1], [0, 0, 1, 1], [], []>} : vector<2x32xf32>, vector<32x128xf32>, vector<2x128xf32> -> vector<2x128xf32>
    %121 = arith.addf %119, %120 : vector<2x128xf32>
    %122 = vector.extract_strided_slice %121 {offsets = [0, 0], sizes = [2, 96], strides = [1, 1]} : vector<2x128xf32> to vector<2x96xf32>
    %123 = arith.negf %122 : vector<2x96xf32>
    %124 = math.exp %123 : vector<2x96xf32>
    %cst_35 = arith.constant 1.000000e+00 : f32
    %125 = vector.broadcast %cst_35 : f32 to vector<2x96xf32>
    %126 = arith.addf %125, %124 : vector<2x96xf32>
    %127 = arith.divf %125, %126 : vector<2x96xf32>
    %128 = vector.extract_strided_slice %121 {offsets = [0, 96], sizes = [2, 32], strides = [1, 1]} : vector<2x128xf32> to vector<2x32xf32>
    %129 = math.tanh %128 : vector<2x32xf32>
    %130 = vector.extract_strided_slice %127 {offsets = [0, 32], sizes = [2, 32], strides = [1, 1]} : vector<2x96xf32> to vector<2x32xf32>
    %131 = arith.mulf %130, %114 : vector<2x32xf32>
    %132 = vector.extract_strided_slice %127 {offsets = [0, 0], sizes = [2, 32], strides = [1, 1]} : vector<2x96xf32> to vector<2x32xf32>
    %133 = arith.mulf %132, %129 : vector<2x32xf32>
    %134 = arith.addf %131, %133 : vector<2x32xf32>
    %135 = vector.extract_strided_slice %127 {offsets = [0, 64], sizes = [2, 32], strides = [1, 1]} : vector<2x96xf32> to vector<2x32xf32>
    %136 = math.tanh %134 : vector<2x32xf32>
    %137 = arith.mulf %135, %136 : vector<2x32xf32>
    %c10 = arith.constant 10 : index
    %c0_36 = arith.constant 0 : index
    %138 = vector.load %arg16[%c10, %c0_36] : memref<16x32xf32, #tpu.memory_space<vmem>>, vector<2x32xf32>
    tpu.vector_store %arg16[%c10, %c0_36], %137 {strides = array<i32>} : memref<16x32xf32, #tpu.memory_space<vmem>>, vector<2x32xf32>,
    %139 = vector.extract_strided_slice %14 {offsets = [12, 0], sizes = [2, 128], strides = [1, 1]} : vector<16x128xf32> to vector<2x128xf32>
    %cst_37 = arith.constant dense<0.000000e+00> : vector<2x128xf32>
    %140 = tpu.matmul %137, %10, %cst_37 {dimension_numbers = #tpu.dot_dimension_numbers<[1], [0], [0], [1], [0, 0, 1, 1], [], []>} : vector<2x32xf32>, vector<32x128xf32>, vector<2x128xf32> -> vector<2x128xf32>
    %141 = arith.addf %139, %140 : vector<2x128xf32>
    %142 = vector.extract_strided_slice %141 {offsets = [0, 0], sizes = [2, 96], strides = [1, 1]} : vector<2x128xf32> to vector<2x96xf32>
    %143 = arith.negf %142 : vector<2x96xf32>
    %144 = math.exp %143 : vector<2x96xf32>
    %cst_38 = arith.constant 1.000000e+00 : f32
    %145 = vector.broadcast %cst_38 : f32 to vector<2x96xf32>
    %146 = arith.addf %145, %144 : vector<2x96xf32>
    %147 = arith.divf %145, %146 : vector<2x96xf32>
    %148 = vector.extract_strided_slice %141 {offsets = [0, 96], sizes = [2, 32], strides = [1, 1]} : vector<2x128xf32> to vector<2x32xf32>
    %149 = math.tanh %148 : vector<2x32xf32>
    %150 = vector.extract_strided_slice %147 {offsets = [0, 32], sizes = [2, 32], strides = [1, 1]} : vector<2x96xf32> to vector<2x32xf32>
    %151 = arith.mulf %150, %134 : vector<2x32xf32>
    %152 = vector.extract_strided_slice %147 {offsets = [0, 0], sizes = [2, 32], strides = [1, 1]} : vector<2x96xf32> to vector<2x32xf32>
    %153 = arith.mulf %152, %149 : vector<2x32xf32>
    %154 = arith.addf %151, %153 : vector<2x32xf32>
    %155 = vector.extract_strided_slice %147 {offsets = [0, 64], sizes = [2, 32], strides = [1, 1]} : vector<2x96xf32> to vector<2x32xf32>
    %156 = math.tanh %154 : vector<2x32xf32>
    %157 = arith.mulf %155, %156 : vector<2x32xf32>
    %c12 = arith.constant 12 : index
    %c0_39 = arith.constant 0 : index
    %158 = vector.load %arg16[%c12, %c0_39] : memref<16x32xf32, #tpu.memory_space<vmem>>, vector<2x32xf32>
    tpu.vector_store %arg16[%c12, %c0_39], %157 {strides = array<i32>} : memref<16x32xf32, #tpu.memory_space<vmem>>, vector<2x32xf32>,
    %159 = vector.extract_strided_slice %14 {offsets = [14, 0], sizes = [2, 128], strides = [1, 1]} : vector<16x128xf32> to vector<2x128xf32>
    %cst_40 = arith.constant dense<0.000000e+00> : vector<2x128xf32>
    %160 = tpu.matmul %157, %10, %cst_40 {dimension_numbers = #tpu.dot_dimension_numbers<[1], [0], [0], [1], [0, 0, 1, 1], [], []>} : vector<2x32xf32>, vector<32x128xf32>, vector<2x128xf32> -> vector<2x128xf32>
    %161 = arith.addf %159, %160 : vector<2x128xf32>
    %162 = vector.extract_strided_slice %161 {offsets = [0, 0], sizes = [2, 96], strides = [1, 1]} : vector<2x128xf32> to vector<2x96xf32>
    %163 = arith.negf %162 : vector<2x96xf32>
    %164 = math.exp %163 : vector<2x96xf32>
    %cst_41 = arith.constant 1.000000e+00 : f32
    %165 = vector.broadcast %cst_41 : f32 to vector<2x96xf32>
    %166 = arith.addf %165, %164 : vector<2x96xf32>
    %167 = arith.divf %165, %166 : vector<2x96xf32>
    %168 = vector.extract_strided_slice %161 {offsets = [0, 96], sizes = [2, 32], strides = [1, 1]} : vector<2x128xf32> to vector<2x32xf32>
    %169 = math.tanh %168 : vector<2x32xf32>
    %170 = vector.extract_strided_slice %167 {offsets = [0, 32], sizes = [2, 32], strides = [1, 1]} : vector<2x96xf32> to vector<2x32xf32>
    %171 = arith.mulf %170, %154 : vector<2x32xf32>
    %172 = vector.extract_strided_slice %167 {offsets = [0, 0], sizes = [2, 32], strides = [1, 1]} : vector<2x96xf32> to vector<2x32xf32>
    %173 = arith.mulf %172, %169 : vector<2x32xf32>
    %174 = arith.addf %171, %173 : vector<2x32xf32>
    %175 = vector.extract_strided_slice %167 {offsets = [0, 64], sizes = [2, 32], strides = [1, 1]} : vector<2x96xf32> to vector<2x32xf32>
    %176 = math.tanh %174 : vector<2x32xf32>
    %177 = arith.mulf %175, %176 : vector<2x32xf32>
    %c14 = arith.constant 14 : index
    %c0_42 = arith.constant 0 : index
    %178 = vector.load %arg16[%c14, %c0_42] : memref<16x32xf32, #tpu.memory_space<vmem>>, vector<2x32xf32>
    tpu.vector_store %arg16[%c14, %c0_42], %177 {strides = array<i32>} : memref<16x32xf32, #tpu.memory_space<vmem>>, vector<2x32xf32>,
    %c0_43 = arith.constant 0 : index
    %c0_44 = arith.constant 0 : index
    %c0_45 = arith.constant 0 : index
    %179 = vector.load %arg14[%c0_43, %c0_44, %c0_45] : memref<2x2x32xf32, #tpu.memory_space<vmem>>, vector<1x2x32xf32>
    %180 = vector.shape_cast %179 : vector<1x2x32xf32> to vector<2x32xf32>
    %181 = vector.shape_cast %177 : vector<2x32xf32> to vector<1x2x32xf32>
    tpu.vector_store %arg14[%c0_43, %c0_44, %c0_45], %181 {strides = array<i32>} : memref<2x2x32xf32, #tpu.memory_space<vmem>>, vector<1x2x32xf32>,
    %c0_46 = arith.constant 0 : index
    %c0_47 = arith.constant 0 : index
    %c0_48 = arith.constant 0 : index
    %182 = vector.load %arg15[%c0_46, %c0_47, %c0_48] : memref<2x2x32xf32, #tpu.memory_space<vmem>>, vector<1x2x32xf32>
    %183 = vector.shape_cast %182 : vector<1x2x32xf32> to vector<2x32xf32>
    %184 = vector.shape_cast %174 : vector<2x32xf32> to vector<1x2x32xf32>
    tpu.vector_store %arg15[%c0_46, %c0_47, %c0_48], %184 {strides = array<i32>} : memref<2x2x32xf32, #tpu.memory_space<vmem>>, vector<1x2x32xf32>,
    %c0_49 = arith.constant 0 : index
    %c0_50 = arith.constant 0 : index
    %185 = vector.load %arg6[%c0_49, %c0_50] : memref<32x128xf32, #tpu.memory_space<vmem>>, vector<32x128xf32>
    %c0_51 = arith.constant 0 : index
    %c0_52 = arith.constant 0 : index
    %186 = vector.load %arg8[%c0_51, %c0_52] : memref<32x128xf32, #tpu.memory_space<vmem>>, vector<32x128xf32>
    %c0_53 = arith.constant 0 : index
    %c0_54 = arith.constant 0 : index
    %187 = vector.load %arg10[%c0_53, %c0_54] : memref<1x128xf32, #tpu.memory_space<vmem>>, vector<1x128xf32>
    %c0_55 = arith.constant 0 : index
    %c0_56 = arith.constant 0 : index
    %188 = vector.load %arg16[%c0_55, %c0_56] : memref<16x32xf32, #tpu.memory_space<vmem>>, vector<16x32xf32>
    %cst_57 = arith.constant dense<0.000000e+00> : vector<16x128xf32>
    %189 = tpu.matmul %188, %185, %cst_57 {dimension_numbers = #tpu.dot_dimension_numbers<[1], [0], [0], [1], [0, 0, 1, 1], [], []>} : vector<16x32xf32>, vector<32x128xf32>, vector<16x128xf32> -> vector<16x128xf32>
    %190 = vector.broadcast %187 : vector<1x128xf32> to vector<16x128xf32>
    %191 = arith.addf %189, %190 : vector<16x128xf32>
    %c1 = arith.constant 1 : index
    %c0_58 = arith.constant 0 : index
    %c0_59 = arith.constant 0 : index
    %192 = vector.load %arg3[%c1, %c0_58, %c0_59] : memref<2x2x32xf32, #tpu.memory_space<vmem>>, vector<1x2x32xf32>
    %193 = vector.shape_cast %192 : vector<1x2x32xf32> to vector<2x32xf32>
    %c1_60 = arith.constant 1 : index
    %c0_61 = arith.constant 0 : index
    %c0_62 = arith.constant 0 : index
    %194 = vector.load %arg4[%c1_60, %c0_61, %c0_62] : memref<2x2x32xf32, #tpu.memory_space<vmem>>, vector<1x2x32xf32>
    %195 = vector.shape_cast %194 : vector<1x2x32xf32> to vector<2x32xf32>
    %196 = vector.extract_strided_slice %191 {offsets = [0, 0], sizes = [2, 128], strides = [1, 1]} : vector<16x128xf32> to vector<2x128xf32>
    %cst_63 = arith.constant dense<0.000000e+00> : vector<2x128xf32>
    %197 = tpu.matmul %193, %186, %cst_63 {dimension_numbers = #tpu.dot_dimension_numbers<[1], [0], [0], [1], [0, 0, 1, 1], [], []>} : vector<2x32xf32>, vector<32x128xf32>, vector<2x128xf32> -> vector<2x128xf32>
    %198 = arith.addf %196, %197 : vector<2x128xf32>
    %199 = vector.extract_strided_slice %198 {offsets = [0, 0], sizes = [2, 96], strides = [1, 1]} : vector<2x128xf32> to vector<2x96xf32>
    %200 = arith.negf %199 : vector<2x96xf32>
    %201 = math.exp %200 : vector<2x96xf32>
    %cst_64 = arith.constant 1.000000e+00 : f32
    %202 = vector.broadcast %cst_64 : f32 to vector<2x96xf32>
    %203 = arith.addf %202, %201 : vector<2x96xf32>
    %204 = arith.divf %202, %203 : vector<2x96xf32>
    %205 = vector.extract_strided_slice %198 {offsets = [0, 96], sizes = [2, 32], strides = [1, 1]} : vector<2x128xf32> to vector<2x32xf32>
    %206 = math.tanh %205 : vector<2x32xf32>
    %207 = vector.extract_strided_slice %204 {offsets = [0, 32], sizes = [2, 32], strides = [1, 1]} : vector<2x96xf32> to vector<2x32xf32>
    %208 = arith.mulf %207, %195 : vector<2x32xf32>
    %209 = vector.extract_strided_slice %204 {offsets = [0, 0], sizes = [2, 32], strides = [1, 1]} : vector<2x96xf32> to vector<2x32xf32>
    %210 = arith.mulf %209, %206 : vector<2x32xf32>
    %211 = arith.addf %208, %210 : vector<2x32xf32>
    %212 = vector.extract_strided_slice %204 {offsets = [0, 64], sizes = [2, 32], strides = [1, 1]} : vector<2x96xf32> to vector<2x32xf32>
    %213 = math.tanh %211 : vector<2x32xf32>
    %214 = arith.mulf %212, %213 : vector<2x32xf32>
    %215 = vector.extract_strided_slice %191 {offsets = [2, 0], sizes = [2, 128], strides = [1, 1]} : vector<16x128xf32> to vector<2x128xf32>
    %cst_65 = arith.constant dense<0.000000e+00> : vector<2x128xf32>
    %216 = tpu.matmul %214, %186, %cst_65 {dimension_numbers = #tpu.dot_dimension_numbers<[1], [0], [0], [1], [0, 0, 1, 1], [], []>} : vector<2x32xf32>, vector<32x128xf32>, vector<2x128xf32> -> vector<2x128xf32>
    %217 = arith.addf %215, %216 : vector<2x128xf32>
    %218 = vector.extract_strided_slice %217 {offsets = [0, 0], sizes = [2, 96], strides = [1, 1]} : vector<2x128xf32> to vector<2x96xf32>
    %219 = arith.negf %218 : vector<2x96xf32>
    %220 = math.exp %219 : vector<2x96xf32>
    %cst_66 = arith.constant 1.000000e+00 : f32
    %221 = vector.broadcast %cst_66 : f32 to vector<2x96xf32>
    %222 = arith.addf %221, %220 : vector<2x96xf32>
    %223 = arith.divf %221, %222 : vector<2x96xf32>
    %224 = vector.extract_strided_slice %217 {offsets = [0, 96], sizes = [2, 32], strides = [1, 1]} : vector<2x128xf32> to vector<2x32xf32>
    %225 = math.tanh %224 : vector<2x32xf32>
    %226 = vector.extract_strided_slice %223 {offsets = [0, 32], sizes = [2, 32], strides = [1, 1]} : vector<2x96xf32> to vector<2x32xf32>
    %227 = arith.mulf %226, %211 : vector<2x32xf32>
    %228 = vector.extract_strided_slice %223 {offsets = [0, 0], sizes = [2, 32], strides = [1, 1]} : vector<2x96xf32> to vector<2x32xf32>
    %229 = arith.mulf %228, %225 : vector<2x32xf32>
    %230 = arith.addf %227, %229 : vector<2x32xf32>
    %231 = vector.extract_strided_slice %223 {offsets = [0, 64], sizes = [2, 32], strides = [1, 1]} : vector<2x96xf32> to vector<2x32xf32>
    %232 = math.tanh %230 : vector<2x32xf32>
    %233 = arith.mulf %231, %232 : vector<2x32xf32>
    %234 = vector.extract_strided_slice %191 {offsets = [4, 0], sizes = [2, 128], strides = [1, 1]} : vector<16x128xf32> to vector<2x128xf32>
    %cst_67 = arith.constant dense<0.000000e+00> : vector<2x128xf32>
    %235 = tpu.matmul %233, %186, %cst_67 {dimension_numbers = #tpu.dot_dimension_numbers<[1], [0], [0], [1], [0, 0, 1, 1], [], []>} : vector<2x32xf32>, vector<32x128xf32>, vector<2x128xf32> -> vector<2x128xf32>
    %236 = arith.addf %234, %235 : vector<2x128xf32>
    %237 = vector.extract_strided_slice %236 {offsets = [0, 0], sizes = [2, 96], strides = [1, 1]} : vector<2x128xf32> to vector<2x96xf32>
    %238 = arith.negf %237 : vector<2x96xf32>
    %239 = math.exp %238 : vector<2x96xf32>
    %cst_68 = arith.constant 1.000000e+00 : f32
    %240 = vector.broadcast %cst_68 : f32 to vector<2x96xf32>
    %241 = arith.addf %240, %239 : vector<2x96xf32>
    %242 = arith.divf %240, %241 : vector<2x96xf32>
    %243 = vector.extract_strided_slice %236 {offsets = [0, 96], sizes = [2, 32], strides = [1, 1]} : vector<2x128xf32> to vector<2x32xf32>
    %244 = math.tanh %243 : vector<2x32xf32>
    %245 = vector.extract_strided_slice %242 {offsets = [0, 32], sizes = [2, 32], strides = [1, 1]} : vector<2x96xf32> to vector<2x32xf32>
    %246 = arith.mulf %245, %230 : vector<2x32xf32>
    %247 = vector.extract_strided_slice %242 {offsets = [0, 0], sizes = [2, 32], strides = [1, 1]} : vector<2x96xf32> to vector<2x32xf32>
    %248 = arith.mulf %247, %244 : vector<2x32xf32>
    %249 = arith.addf %246, %248 : vector<2x32xf32>
    %250 = vector.extract_strided_slice %242 {offsets = [0, 64], sizes = [2, 32], strides = [1, 1]} : vector<2x96xf32> to vector<2x32xf32>
    %251 = math.tanh %249 : vector<2x32xf32>
    %252 = arith.mulf %250, %251 : vector<2x32xf32>
    %253 = vector.extract_strided_slice %191 {offsets = [6, 0], sizes = [2, 128], strides = [1, 1]} : vector<16x128xf32> to vector<2x128xf32>
    %cst_69 = arith.constant dense<0.000000e+00> : vector<2x128xf32>
    %254 = tpu.matmul %252, %186, %cst_69 {dimension_numbers = #tpu.dot_dimension_numbers<[1], [0], [0], [1], [0, 0, 1, 1], [], []>} : vector<2x32xf32>, vector<32x128xf32>, vector<2x128xf32> -> vector<2x128xf32>
    %255 = arith.addf %253, %254 : vector<2x128xf32>
    %256 = vector.extract_strided_slice %255 {offsets = [0, 0], sizes = [2, 96], strides = [1, 1]} : vector<2x128xf32> to vector<2x96xf32>
    %257 = arith.negf %256 : vector<2x96xf32>
    %258 = math.exp %257 : vector<2x96xf32>
    %cst_70 = arith.constant 1.000000e+00 : f32
    %259 = vector.broadcast %cst_70 : f32 to vector<2x96xf32>
    %260 = arith.addf %259, %258 : vector<2x96xf32>
    %261 = arith.divf %259, %260 : vector<2x96xf32>
    %262 = vector.extract_strided_slice %255 {offsets = [0, 96], sizes = [2, 32], strides = [1, 1]} : vector<2x128xf32> to vector<2x32xf32>
    %263 = math.tanh %262 : vector<2x32xf32>
    %264 = vector.extract_strided_slice %261 {offsets = [0, 32], sizes = [2, 32], strides = [1, 1]} : vector<2x96xf32> to vector<2x32xf32>
    %265 = arith.mulf %264, %249 : vector<2x32xf32>
    %266 = vector.extract_strided_slice %261 {offsets = [0, 0], sizes = [2, 32], strides = [1, 1]} : vector<2x96xf32> to vector<2x32xf32>
    %267 = arith.mulf %266, %263 : vector<2x32xf32>
    %268 = arith.addf %265, %267 : vector<2x32xf32>
    %269 = vector.extract_strided_slice %261 {offsets = [0, 64], sizes = [2, 32], strides = [1, 1]} : vector<2x96xf32> to vector<2x32xf32>
    %270 = math.tanh %268 : vector<2x32xf32>
    %271 = arith.mulf %269, %270 : vector<2x32xf32>
    %272 = vector.extract_strided_slice %191 {offsets = [8, 0], sizes = [2, 128], strides = [1, 1]} : vector<16x128xf32> to vector<2x128xf32>
    %cst_71 = arith.constant dense<0.000000e+00> : vector<2x128xf32>
    %273 = tpu.matmul %271, %186, %cst_71 {dimension_numbers = #tpu.dot_dimension_numbers<[1], [0], [0], [1], [0, 0, 1, 1], [], []>} : vector<2x32xf32>, vector<32x128xf32>, vector<2x128xf32> -> vector<2x128xf32>
    %274 = arith.addf %272, %273 : vector<2x128xf32>
    %275 = vector.extract_strided_slice %274 {offsets = [0, 0], sizes = [2, 96], strides = [1, 1]} : vector<2x128xf32> to vector<2x96xf32>
    %276 = arith.negf %275 : vector<2x96xf32>
    %277 = math.exp %276 : vector<2x96xf32>
    %cst_72 = arith.constant 1.000000e+00 : f32
    %278 = vector.broadcast %cst_72 : f32 to vector<2x96xf32>
    %279 = arith.addf %278, %277 : vector<2x96xf32>
    %280 = arith.divf %278, %279 : vector<2x96xf32>
    %281 = vector.extract_strided_slice %274 {offsets = [0, 96], sizes = [2, 32], strides = [1, 1]} : vector<2x128xf32> to vector<2x32xf32>
    %282 = math.tanh %281 : vector<2x32xf32>
    %283 = vector.extract_strided_slice %280 {offsets = [0, 32], sizes = [2, 32], strides = [1, 1]} : vector<2x96xf32> to vector<2x32xf32>
    %284 = arith.mulf %283, %268 : vector<2x32xf32>
    %285 = vector.extract_strided_slice %280 {offsets = [0, 0], sizes = [2, 32], strides = [1, 1]} : vector<2x96xf32> to vector<2x32xf32>
    %286 = arith.mulf %285, %282 : vector<2x32xf32>
    %287 = arith.addf %284, %286 : vector<2x32xf32>
    %288 = vector.extract_strided_slice %280 {offsets = [0, 64], sizes = [2, 32], strides = [1, 1]} : vector<2x96xf32> to vector<2x32xf32>
    %289 = math.tanh %287 : vector<2x32xf32>
    %290 = arith.mulf %288, %289 : vector<2x32xf32>
    %291 = vector.extract_strided_slice %191 {offsets = [10, 0], sizes = [2, 128], strides = [1, 1]} : vector<16x128xf32> to vector<2x128xf32>
    %cst_73 = arith.constant dense<0.000000e+00> : vector<2x128xf32>
    %292 = tpu.matmul %290, %186, %cst_73 {dimension_numbers = #tpu.dot_dimension_numbers<[1], [0], [0], [1], [0, 0, 1, 1], [], []>} : vector<2x32xf32>, vector<32x128xf32>, vector<2x128xf32> -> vector<2x128xf32>
    %293 = arith.addf %291, %292 : vector<2x128xf32>
    %294 = vector.extract_strided_slice %293 {offsets = [0, 0], sizes = [2, 96], strides = [1, 1]} : vector<2x128xf32> to vector<2x96xf32>
    %295 = arith.negf %294 : vector<2x96xf32>
    %296 = math.exp %295 : vector<2x96xf32>
    %cst_74 = arith.constant 1.000000e+00 : f32
    %297 = vector.broadcast %cst_74 : f32 to vector<2x96xf32>
    %298 = arith.addf %297, %296 : vector<2x96xf32>
    %299 = arith.divf %297, %298 : vector<2x96xf32>
    %300 = vector.extract_strided_slice %293 {offsets = [0, 96], sizes = [2, 32], strides = [1, 1]} : vector<2x128xf32> to vector<2x32xf32>
    %301 = math.tanh %300 : vector<2x32xf32>
    %302 = vector.extract_strided_slice %299 {offsets = [0, 32], sizes = [2, 32], strides = [1, 1]} : vector<2x96xf32> to vector<2x32xf32>
    %303 = arith.mulf %302, %287 : vector<2x32xf32>
    %304 = vector.extract_strided_slice %299 {offsets = [0, 0], sizes = [2, 32], strides = [1, 1]} : vector<2x96xf32> to vector<2x32xf32>
    %305 = arith.mulf %304, %301 : vector<2x32xf32>
    %306 = arith.addf %303, %305 : vector<2x32xf32>
    %307 = vector.extract_strided_slice %299 {offsets = [0, 64], sizes = [2, 32], strides = [1, 1]} : vector<2x96xf32> to vector<2x32xf32>
    %308 = math.tanh %306 : vector<2x32xf32>
    %309 = arith.mulf %307, %308 : vector<2x32xf32>
    %310 = vector.extract_strided_slice %191 {offsets = [12, 0], sizes = [2, 128], strides = [1, 1]} : vector<16x128xf32> to vector<2x128xf32>
    %cst_75 = arith.constant dense<0.000000e+00> : vector<2x128xf32>
    %311 = tpu.matmul %309, %186, %cst_75 {dimension_numbers = #tpu.dot_dimension_numbers<[1], [0], [0], [1], [0, 0, 1, 1], [], []>} : vector<2x32xf32>, vector<32x128xf32>, vector<2x128xf32> -> vector<2x128xf32>
    %312 = arith.addf %310, %311 : vector<2x128xf32>
    %313 = vector.extract_strided_slice %312 {offsets = [0, 0], sizes = [2, 96], strides = [1, 1]} : vector<2x128xf32> to vector<2x96xf32>
    %314 = arith.negf %313 : vector<2x96xf32>
    %315 = math.exp %314 : vector<2x96xf32>
    %cst_76 = arith.constant 1.000000e+00 : f32
    %316 = vector.broadcast %cst_76 : f32 to vector<2x96xf32>
    %317 = arith.addf %316, %315 : vector<2x96xf32>
    %318 = arith.divf %316, %317 : vector<2x96xf32>
    %319 = vector.extract_strided_slice %312 {offsets = [0, 96], sizes = [2, 32], strides = [1, 1]} : vector<2x128xf32> to vector<2x32xf32>
    %320 = math.tanh %319 : vector<2x32xf32>
    %321 = vector.extract_strided_slice %318 {offsets = [0, 32], sizes = [2, 32], strides = [1, 1]} : vector<2x96xf32> to vector<2x32xf32>
    %322 = arith.mulf %321, %306 : vector<2x32xf32>
    %323 = vector.extract_strided_slice %318 {offsets = [0, 0], sizes = [2, 32], strides = [1, 1]} : vector<2x96xf32> to vector<2x32xf32>
    %324 = arith.mulf %323, %320 : vector<2x32xf32>
    %325 = arith.addf %322, %324 : vector<2x32xf32>
    %326 = vector.extract_strided_slice %318 {offsets = [0, 64], sizes = [2, 32], strides = [1, 1]} : vector<2x96xf32> to vector<2x32xf32>
    %327 = math.tanh %325 : vector<2x32xf32>
    %328 = arith.mulf %326, %327 : vector<2x32xf32>
    %329 = vector.extract_strided_slice %191 {offsets = [14, 0], sizes = [2, 128], strides = [1, 1]} : vector<16x128xf32> to vector<2x128xf32>
    %cst_77 = arith.constant dense<0.000000e+00> : vector<2x128xf32>
    %330 = tpu.matmul %328, %186, %cst_77 {dimension_numbers = #tpu.dot_dimension_numbers<[1], [0], [0], [1], [0, 0, 1, 1], [], []>} : vector<2x32xf32>, vector<32x128xf32>, vector<2x128xf32> -> vector<2x128xf32>
    %331 = arith.addf %329, %330 : vector<2x128xf32>
    %332 = vector.extract_strided_slice %331 {offsets = [0, 0], sizes = [2, 96], strides = [1, 1]} : vector<2x128xf32> to vector<2x96xf32>
    %333 = arith.negf %332 : vector<2x96xf32>
    %334 = math.exp %333 : vector<2x96xf32>
    %cst_78 = arith.constant 1.000000e+00 : f32
    %335 = vector.broadcast %cst_78 : f32 to vector<2x96xf32>
    %336 = arith.addf %335, %334 : vector<2x96xf32>
    %337 = arith.divf %335, %336 : vector<2x96xf32>
    %338 = vector.extract_strided_slice %331 {offsets = [0, 96], sizes = [2, 32], strides = [1, 1]} : vector<2x128xf32> to vector<2x32xf32>
    %339 = math.tanh %338 : vector<2x32xf32>
    %340 = vector.extract_strided_slice %337 {offsets = [0, 32], sizes = [2, 32], strides = [1, 1]} : vector<2x96xf32> to vector<2x32xf32>
    %341 = arith.mulf %340, %325 : vector<2x32xf32>
    %342 = vector.extract_strided_slice %337 {offsets = [0, 0], sizes = [2, 32], strides = [1, 1]} : vector<2x96xf32> to vector<2x32xf32>
    %343 = arith.mulf %342, %339 : vector<2x32xf32>
    %344 = arith.addf %341, %343 : vector<2x32xf32>
    %345 = vector.extract_strided_slice %337 {offsets = [0, 64], sizes = [2, 32], strides = [1, 1]} : vector<2x96xf32> to vector<2x32xf32>
    %346 = math.tanh %344 : vector<2x32xf32>
    %347 = arith.mulf %345, %346 : vector<2x32xf32>
    %c1_79 = arith.constant 1 : index
    %c0_80 = arith.constant 0 : index
    %c0_81 = arith.constant 0 : index
    %348 = vector.load %arg14[%c1_79, %c0_80, %c0_81] : memref<2x2x32xf32, #tpu.memory_space<vmem>>, vector<1x2x32xf32>
    %349 = vector.shape_cast %348 : vector<1x2x32xf32> to vector<2x32xf32>
    %350 = vector.shape_cast %347 : vector<2x32xf32> to vector<1x2x32xf32>
    tpu.vector_store %arg14[%c1_79, %c0_80, %c0_81], %350 {strides = array<i32>} : memref<2x2x32xf32, #tpu.memory_space<vmem>>, vector<1x2x32xf32>,
    %c1_82 = arith.constant 1 : index
    %c0_83 = arith.constant 0 : index
    %c0_84 = arith.constant 0 : index
    %351 = vector.load %arg15[%c1_82, %c0_83, %c0_84] : memref<2x2x32xf32, #tpu.memory_space<vmem>>, vector<1x2x32xf32>
    %352 = vector.shape_cast %351 : vector<1x2x32xf32> to vector<2x32xf32>
    %353 = vector.shape_cast %344 : vector<2x32xf32> to vector<1x2x32xf32>
    tpu.vector_store %arg15[%c1_82, %c0_83, %c0_84], %353 {strides = array<i32>} : memref<2x2x32xf32, #tpu.memory_space<vmem>>, vector<1x2x32xf32>,
    %c0_85 = arith.constant 0 : index
    %c0_86 = arith.constant 0 : index
    %354 = vector.load %arg11[%c0_85, %c0_86] : memref<32x64xf32, #tpu.memory_space<vmem>>, vector<32x64xf32>
    %cst_87 = arith.constant dense<0.000000e+00> : vector<2x64xf32>
    %355 = tpu.matmul %347, %354, %cst_87 {dimension_numbers = #tpu.dot_dimension_numbers<[1], [0], [0], [1], [0, 0, 1, 1], [], []>} : vector<2x32xf32>, vector<32x64xf32>, vector<2x64xf32> -> vector<2x64xf32>
    %c0_88 = arith.constant 0 : index
    %c0_89 = arith.constant 0 : index
    %356 = vector.load %arg12[%c0_88, %c0_89] : memref<1x64xf32, #tpu.memory_space<vmem>>, vector<1x64xf32>
    %357 = vector.broadcast %356 : vector<1x64xf32> to vector<2x64xf32>
    %358 = arith.addf %355, %357 : vector<2x64xf32>
    %c0_90 = arith.constant 0 : index
    %c0_91 = arith.constant 0 : index
    %359 = vector.load %arg13[%c0_90, %c0_91] : memref<2x64xf32, #tpu.memory_space<vmem>>, vector<2x64xf32>
    tpu.vector_store %arg13[%c0_90, %c0_91], %358 {strides = array<i32>} : memref<2x64xf32, #tpu.memory_space<vmem>>, vector<2x64xf32>,
    return
  }
  func.func @transform_0(%arg0: i32) -> (i32, i32) {
    %c0_i32 = arith.constant 0 : i32
    %c0_i32_0 = arith.constant 0 : i32
    %c0_i32_1 = arith.constant 0 : i32
    return %c0_i32, %c0_i32_0 : i32, i32
  }
  func.func @transform_1(%arg0: i32) -> (i32, i32) {
    %c0_i32 = arith.constant 0 : i32
    %c0_i32_0 = arith.constant 0 : i32
    %c0_i32_1 = arith.constant 0 : i32
    return %c0_i32, %c0_i32_0 : i32, i32
  }
  func.func @transform_2(%arg0: i32) -> (i32, i32, i32) {
    %c0_i32 = arith.constant 0 : i32
    %c0_i32_0 = arith.constant 0 : i32
    %c0_i32_1 = arith.constant 0 : i32
    %c0_i32_2 = arith.constant 0 : i32
    return %c0_i32, %c0_i32_0, %c0_i32_1 : i32, i32, i32
  }
  func.func @transform_3(%arg0: i32) -> (i32, i32, i32) {
    %c0_i32 = arith.constant 0 : i32
    %c0_i32_0 = arith.constant 0 : i32
    %c0_i32_1 = arith.constant 0 : i32
    %c0_i32_2 = arith.constant 0 : i32
    return %c0_i32, %c0_i32_0, %c0_i32_1 : i32, i32, i32
  }
  func.func @transform_4(%arg0: i32) -> (i32, i32) {
    %c0_i32 = arith.constant 0 : i32
    %c0_i32_0 = arith.constant 0 : i32
    %c0_i32_1 = arith.constant 0 : i32
    return %c0_i32, %c0_i32_0 : i32, i32
  }
  func.func @transform_5(%arg0: i32) -> (i32, i32) {
    %c0_i32 = arith.constant 0 : i32
    %c0_i32_0 = arith.constant 0 : i32
    %c0_i32_1 = arith.constant 0 : i32
    return %c0_i32, %c0_i32_0 : i32, i32
  }
  func.func @transform_6(%arg0: i32) -> (i32, i32) {
    %c0_i32 = arith.constant 0 : i32
    %c0_i32_0 = arith.constant 0 : i32
    %c0_i32_1 = arith.constant 0 : i32
    return %c0_i32, %c0_i32_0 : i32, i32
  }
  func.func @transform_7(%arg0: i32) -> (i32, i32) {
    %c0_i32 = arith.constant 0 : i32
    %c0_i32_0 = arith.constant 0 : i32
    %c0_i32_1 = arith.constant 0 : i32
    return %c0_i32, %c0_i32_0 : i32, i32
  }
  func.func @transform_8(%arg0: i32) -> (i32, i32) {
    %c0_i32 = arith.constant 0 : i32
    %c0_i32_0 = arith.constant 0 : i32
    %c0_i32_1 = arith.constant 0 : i32
    return %c0_i32, %c0_i32_0 : i32, i32
  }
  func.func @transform_9(%arg0: i32) -> (i32, i32) {
    %c0_i32 = arith.constant 0 : i32
    %c0_i32_0 = arith.constant 0 : i32
    %c0_i32_1 = arith.constant 0 : i32
    return %c0_i32, %c0_i32_0 : i32, i32
  }
  func.func @transform_10(%arg0: i32) -> (i32, i32) {
    %c0_i32 = arith.constant 0 : i32
    %c0_i32_0 = arith.constant 0 : i32
    %c0_i32_1 = arith.constant 0 : i32
    return %c0_i32, %c0_i32_0 : i32, i32
  }
  func.func @transform_11(%arg0: i32) -> (i32, i32) {
    %c0_i32 = arith.constant 0 : i32
    %c0_i32_0 = arith.constant 0 : i32
    %c0_i32_1 = arith.constant 0 : i32
    return %c0_i32, %c0_i32_0 : i32, i32
  }
  func.func @transform_12(%arg0: i32) -> (i32, i32) {
    %c0_i32 = arith.constant 0 : i32
    %c0_i32_0 = arith.constant 0 : i32
    %c0_i32_1 = arith.constant 0 : i32
    return %c0_i32, %c0_i32_0 : i32, i32
  }
  func.func @transform_13(%arg0: i32) -> (i32, i32, i32) {
    %c0_i32 = arith.constant 0 : i32
    %c0_i32_0 = arith.constant 0 : i32
    %c0_i32_1 = arith.constant 0 : i32
    %c0_i32_2 = arith.constant 0 : i32
    return %c0_i32, %c0_i32_0, %c0_i32_1 : i32, i32, i32
  }
  func.func @transform_14(%arg0: i32) -> (i32, i32, i32) {
    %c0_i32 = arith.constant 0 : i32
    %c0_i32_0 = arith.constant 0 : i32
    %c0_i32_1 = arith.constant 0 : i32
    %c0_i32_2 = arith.constant 0 : i32
    return %c0_i32, %c0_i32_0, %c0_i32_1 : i32, i32, i32
  }
}

</mosaic_0001>

<bundles_post_ra>
// kernel: rnn_forward.1
= control target key start
LH: loop header
LB: loop body
LE: loop exit
PB: predicated region body
PF: predicated region fallthrough
CT: control target
= control target key end

     0   :  { %20 = vsyncpa [#allocation4], 0  ;;  %s3490_s0 = inlined_call_operand.vmem [shape: s32[16,1], index: 0, kind: input, shape index: {}]   ;;  %s3491_s1 = inlined_call_operand.vmem [shape: f32[50,32], index: 1, kind: input, shape index: {}]   ;;  %s3492_s2 = inlined_call_operand.vmem [shape: f32[2,2,32], index: 2, kind: input, shape index: {}]   ;;  %s3493_s3 = inlined_call_operand.vmem [shape: f32[2,2,32], index: 3, kind: input, shape index: {}]   ;;  %s3494_s4 = inlined_call_operand.vmem [shape: f32[32,128], index: 4, kind: input, shape index: {}]   ;;  %s3495_s5 = inlined_call_operand.vmem [shape: f32[32,128], index: 5, kind: input, shape index: {}]   ;;  %s3496_s6 = inlined_call_operand.vmem [shape: f32[32,128], index: 6, kind: input, shape index: {}]   ;;  %s3497_s7 = inlined_call_operand.vmem [shape: f32[32,128], index: 7, kind: input, shape index: {}]   ;;  %s3498_s8 = inlined_call_operand.hbm [shape: f32[1,128], index: 8, kind: input, shape index: {}]   ;;  %s3499_s9 = inlined_call_operand.hbm [shape: f32[1,128], index: 9, kind: input, shape index: {}]   ;;  %s3500_s10 = inlined_call_operand.hbm [shape: f32[32,64], index: 10, kind: input, shape index: {}]   ;;  %s3501_s11 = inlined_call_operand.hbm [shape: f32[1,64], index: 11, kind: input, shape index: {}]   ;;  %s3502_s12 = inlined_call_operand.hbm [shape: f32[2,64], index: 12, kind: output, shape index: {0}]   ;;  %s3503_s13 = inlined_call_operand.hbm [shape: f32[2,2,32], index: 13, kind: output, shape index: {1}]   ;;  %s3504_s14 = inlined_call_operand.hbm [shape: f32[2,2,32], index: 14, kind: output, shape index: {2}]  }
   0x1   :  { %21 = vsyncpa [#allocation7], 0 }
   0x2   :  { %22 = vsyncpa [#allocation10], 0 }
   0x3   :  { %23 = vsyncpa [#allocation5], 0 }
   0x4   :  { %24 = vsyncpa [#allocation13], 0  ;;  %s2954_s29 = smov [#allocation6]   ;;  %s2955_s15 = smov [#allocation3]  }
   0x5   :  { %s57_s30 = sshll.u32 %s2954_s29, 4  ;;  %s47_s16 = sshll.u32 %s2955_s15, 4  ;;  %s58_s30 = int_to_ptr.vmem [resolvable:$true] %s57_s30  ;;  %s48_s16 = int_to_ptr.vmem [resolvable:$true] %s47_s16 }
   0x6   :  { %s2812_s17 = scalar_lea.vmem %s58_s30, 16  ;;  %s2816_s18 = scalar_lea.vmem %s58_s30, 32 }
   0x7   :  { %p2813_p0 = scmp.ne.s32.totalorder %s58_s30, %s2812_s17  ;;  %p2817_p1 = scmp.lt.s32.totalorder %s58_s30, %s58_s30 }
   0x8   :  { %p2818_p2 = scmp.lt.s32.totalorder %s2816_s18, %s2812_s17 }
   0xa   :  { %p2819_p3 = por %p2818_p2, %p2817_p1 }
   0xc   :  { %p2820_p4 = pnand %p2819_p3, %p2813_p0 }
   0xe   :  { %2823 = shalt.err (!%p2820_p4)
}
   0xf   :  { %60 = dma.hbm_to_vmem [thread:$0]  %s3499_s9, 16, %s58_s30, [#allocation7]  }
  0x10   :  { %s2832_s21 = scalar_lea.vmem %s48_s16, 16  ;;  %s2836_s22 = scalar_lea.vmem %s48_s16, 32 }
  0x11   :  { %p2833_p5 = scmp.ne.s32.totalorder %s48_s16, %s2832_s21  ;;  %p2837_p6 = scmp.lt.s32.totalorder %s48_s16, %s48_s16 }
  0x12   :  { %p2838_p7 = scmp.lt.s32.totalorder %s2836_s22, %s2832_s21 }
  0x14   :  { %p2839_p8 = por %p2838_p7, %p2837_p6 }
  0x16   :  { %p2840_p9 = pnand %p2839_p8, %p2833_p5 }
  0x18   :  { %2843 = shalt.err (!%p2840_p9)
}
  0x19   :  { %50 = dma.hbm_to_vmem [thread:$0]  %s3498_s8, 16, %s48_s16, [#allocation4]  }
  0x1a   :  { %s2956_s25 = smov [#allocation8]  }
  0x1b   :  { %s66_s26 = sshll.u32 %s2956_s25, 4  ;;  %s67_s26 = int_to_ptr.vmem [resolvable:$true] %s66_s26 }
  0x1c   :  { %s2852_s27 = scalar_lea.vmem %s67_s26, 512  ;;  %p2857_p11 = scmp.lt.s32.totalorder %s67_s26, %s67_s26 }
  0x1d   :  { %p2853_p10 = scmp.ne.s32.totalorder %s67_s26, %s2852_s27  ;;  %p2858_p12 = scmp.lt.s32.totalorder %s2852_s27, %s2852_s27 }
  0x1f   :  { %p2859_p13 = por %p2858_p12, %p2857_p11 }
  0x21   :  { %p2860_p0 = pnand %p2859_p13, %p2853_p10 }
  0x23   :  { %2863 = shalt.err (!%p2860_p0)
}
  0x24   :  { %s2957_s9 = smov 128   ;;  %s2958_s28 = smov 8  }
  0x25   :  { %72 = dma.hbm_to_vmem [thread:$0]  %s3500_s10, 512, %s67_s26, [#allocation7], %s2957_s9, %s2957_s9, %s2958_s28  }
  0x26   :  { %s2959_s15 = smov [#allocation9]  }
  0x27   :  { %s79_s17 = sshll.u32 %s2959_s15, 4  ;;  %s80_s17 = int_to_ptr.vmem [resolvable:$true] %s79_s17 }
  0x28   :  { %s2872_s8 = scalar_lea.vmem %s80_s17, 16  ;;  %s2876_s16 = scalar_lea.vmem %s80_s17, 32 }
  0x29   :  { %p2873_p1 = scmp.ne.s32.totalorder %s80_s17, %s2872_s8  ;;  %p2877_p2 = scmp.lt.s32.totalorder %s80_s17, %s80_s17 }
  0x2a   :  { %p2878_p3 = scmp.lt.s32.totalorder %s2876_s16, %s2872_s8 }
  0x2c   :  { %p2879_p4 = por %p2878_p3, %p2877_p2 }
  0x2e   :  { %p2880_p5 = pnand %p2879_p4, %p2873_p1 }
  0x30   :  { %2883 = shalt.err (!%p2880_p5)
}
  0x31   :  { %82 = dma.hbm_to_vmem [thread:$0]  %s3501_s11, 16, %s80_s17, [#allocation10]  }
  0x32   :  { %2944 = dma.done.wait [#allocation4], 16  }
  0x33   :  { %2945 = vsyncadd [#allocation4], 4294967280 }
  0x34   :  { %2946 = dma.done.wait [#allocation7], 528  }
  0x35   :  { %2947 = vsyncadd [#allocation7], 4294966768 }
  0x36   :  { %2948 = dma.done.wait [#allocation10], 16  }
  0x37   :  { %2949 = vsyncadd [#allocation10], 4294967280  ;;  %v2960_v0 = vmov 0   ;;  %vm123_vm0 = vcmask 1041408   ;;  %v97_v1 = vld [vmem:[%s3490_s0] sm:$0xff]  ;;  %v114_v3 = vld [vmem:[%s3491_s1 + $0x28] sm:$0xff]  ;;  %v95_v14 = vlaneseq }
  0x38   :  { %2675 = vset.pattern.permute.xlu0 %v2960_v0  ;;  %v115_v2 = vld [vmem:[%s3491_s1 + $0x30] sm:$0x3]  ;;  %v98_v4 = vld [vmem:[%s3490_s0 + $0x8] sm:$0xff]  ;;  %v113_v5 = vld [vmem:[%s3491_s1 + $0x20] sm:$0xff]  ;;  %v2961_v13 = vmov 0.0   ;;  %vm116_vm1 = vcmask 408576  }
  0x39   :  { %100 = vperm.xlu0 %2675, %v97_v1   ;;  %2433 = vmatprep.subr.msk.mxu0 %vm123_vm0, %v115_v2  ;;  %v205_v6 = vld [vmem:[%s3494_s4 + $0x18] sm:$0xff]  ;;  %v204_v8 = vld [vmem:[%s3494_s4 + $0x10] sm:$0xff]  ;;  %v203_v10 = vld [vmem:[%s3494_s4 + $0x8] sm:$0xff]  ;;  %v96_v15 = vand.u32 127, %v95_v14  ;;  %vm2962_vm4 = vmmov 0   ;;  %vm217_vm5 = vcmask 261120  }
  0x3a   :  { %2434 = vmatpush3.msk.msra.mxu0 %vm123_vm0, %v115_v2  ;;  %v112_v7 = vld [vmem:[%s3491_s1 + $0x18] sm:$0xff]  ;;  %2450 = vmatprep.subr.mxu1 %v205_v6  ;;  %v111_v9 = vld [vmem:[%s3491_s1 + $0x10] sm:$0xff]  ;;  %v110_v11 = vld [vmem:[%s3491_s1 + $0x8] sm:$0xff]  ;;  %s2963_s29 = smov 32   ;;  %s2964_s17 = smov 64   ;;  %vm407_vm6 = vcmask 254976  }
  0x3b   :  { %2435 = vmatprep.subr.mxu0 %v114_v3  ;;  %2451 = vmatpush3.msra.mxu1 %v205_v6  ;;  %v109_v12 = vld [vmem:[%s3491_s1] sm:$0xff]  ;;  %v3103_v21 = vld [vmem:[%s3496_s6 + $0x18] sm:$0xff]  ;;  %v3110_v22 = vld [vmem:[%s3496_s6 + $0x10] sm:$0xff]  ;;  %vm516_vm7 = vcmask 257026   ;;  %vm740_vm8 = vcmask 261126   ;;  %vm628_vm9 = vcmask 259076  }
  0x3c   :  { %2436 = vmatpush3.msra.mxu0 %v114_v3  ;;  %2452 = vmatprep.subr.mxu1 %v204_v8  ;;  %v202_v20 = vld [vmem:[%s3494_s4] sm:$0xff]  ;;  %v3116_v23 = vld [vmem:[%s3496_s6 + $0x8] sm:$0xff]  ;;  %v2285_v28 = vld [vmem:[#allocation3] ss:$0 sm:$0xff] }
  0x3d   :  { %103 = vperm.xlu0 %2675, %v98_v4   ;;  %2437 = vmatprep.subr.mxu0 %v113_v5  ;;  %v3123_v24 = vld [vmem:[%s3496_s6] sm:$0xff] }
  0x3e   :  { %2438 = vmatpush3.msra.mxu0 %v113_v5  ;;  %2453 = vmatpush3.msra.mxu1 %v204_v8  ;;  %v299_v27 = vld [vmem:[%s3492_s2] sm:$0x3] }
  0x3f   :  { %2439 = vmatprep.subr.mxu0 %v112_v7  ;;  %2454 = vmatprep.subr.mxu1 %v203_v10  ;;  %v300_v37 = vld [vmem:[%s3493_s3] sm:$0x3] }
  0x40   :  { %2440 = vmatpush3.msra.mxu0 %v112_v7  ;;  %2455 = vmatpush3.msra.mxu1 %v203_v10 }
  0x41   :  { %2441 = vmatprep.subr.mxu0 %v111_v9  ;;  %2456 = vmatprep.subr.mxu1 %v202_v20 }
  0x42   :  { %2442 = vmatpush3.msra.mxu0 %v111_v9  ;;  %2457 = vmatpush3.msra.mxu1 %v202_v20 }
  0x43   :  { %2443 = vmatprep.subr.mxu0 %v110_v11  ;;  %2461 = vmatprep.subr.mxu1 %v2961_v13 }
  0x44   :  { %2444 = vmatpush3.msra.mxu0 %v110_v11 }
  0x45   :  { %2445 = vmatprep.subr.mxu0 %v109_v12 }
  0x46   :  { %2446 = vmatpush3.msra.mxu0 %v109_v12 }
  0x47   :  { %2472 = vmatprep.subr.mxu0 %v2961_v13 }
  0xb4   :  { %v101_v16 = vpop.permute.xlu0 %100 }
  0xb5   :  { %vm105_vm2 = vcmp.eq.s32.totalorder %v96_v15, %v101_v16 }
  0xb6   :  { %v107_v17 = vsel %vm105_vm2, 1.0, %v2961_v13 }
  0xb7   :  { %2447 = vmatprep.mubr.msk.f32.mxu0 %vm116_vm1, %v107_v17 }
  0xb8   :  { %v104_v18 = vpop.permute.xlu0 %103 }
  0xb9   :  { %vm106_vm3 = vcmp.eq.s32.totalorder %v96_v15, %v104_v18 }
  0xba   :  { %v108_v19 = vsel %vm106_vm3, 1.0, %v2961_v13 }
  0xbb   :  { %2448 = vmatmul.mubr.msk.f32.vlgmr.msra.gmra.mxu0 %vm116_vm1, %v108_v19 }
  0xbc   :  { %2473 = vmatpush3.msra.mxu0 %v3103_v21  ;;  %2480 = vmatprep.mubr.msk.f32.mxu0 %vm2962_vm4, %v2961_v13 }
  0xbd   :  { %2474 = vmatprep.subr.mxu0 %v2961_v13 }
  0xbe   :  { %2475 = vmatpush3.msra.mxu0 %v3110_v22 }
  0xbf   :  { %2476 = vmatprep.subr.mxu0 %v2961_v13 }
  0xc0   :  { %2477 = vmatpush3.msra.mxu0 %v3116_v23 }
  0xc1   :  { %2478 = vmatprep.subr.mxu0 %v2961_v13 }
  0xc2   :  { %2479 = vmatpush3.msra.mxu0 %v3123_v24 }
  0xc3   :  { %2494 = vmatprep.subr.mxu0 %v2961_v13 }
 0x17b   :  { %v2449_v25 = vpop.f32.mrf.mxu0 }
 0x17d   :  { %v193_v26 = vpop.f32.mrf.mxu0 }
 0x17e   :  { %2458 = vmatprep.mubr.msk.f32.mxu1 %vm217_vm5, %v193_v26 }
 0x17f   :  { %2459 = vmatmul.mubr.msk.f32.vlgmr.msra.gmra.mxu1 %vm217_vm5, %v2449_v25 }
 0x180   :  { %2462 = vmatpush3.msra.mxu1 %v3103_v21  ;;  %2469 = vmatprep.mubr.msk.f32.mxu1 %vm2962_vm4, %v2961_v13 }
 0x181   :  { %2463 = vmatprep.subr.mxu1 %v2961_v13 }
 0x182   :  { %2464 = vmatpush3.msra.mxu1 %v3110_v22 }
 0x183   :  { %2465 = vmatprep.subr.mxu1 %v2961_v13 }
 0x184   :  { %2466 = vmatpush3.msra.mxu1 %v3116_v23 }
 0x185   :  { %2467 = vmatprep.subr.mxu1 %v2961_v13 }
 0x186   :  { %2468 = vmatpush3.msra.mxu1 %v3123_v24 }
 0x187   :  { %2470 = vmatmul.mubr.msk.f32.vlgmr.msra.gmra.mxu1 %vm217_vm5, %v299_v27  ;;  %2483 = vmatprep.subr.mxu1 %v2961_v13 }
 0x188   :  { %2484 = vmatpush3.msra.mxu1 %v3103_v21  ;;  %2491 = vmatprep.mubr.msk.f32.mxu1 %vm2962_vm4, %v2961_v13 }
 0x189   :  { %2485 = vmatprep.subr.mxu1 %v2961_v13 }
 0x18a   :  { %2486 = vmatpush3.msra.mxu1 %v3110_v22 }
 0x18b   :  { %2487 = vmatprep.subr.mxu1 %v2961_v13 }
 0x18c   :  { %2488 = vmatpush3.msra.mxu1 %v3116_v23 }
 0x18d   :  { %2489 = vmatprep.subr.mxu1 %v2961_v13 }
 0x18e   :  { %2490 = vmatpush3.msra.mxu1 %v3123_v24 }
 0x18f   :  { %2505 = vmatprep.subr.mxu1 %v2961_v13 }
 0x23f   :  { %v2460_v29 = vpop.f32.mrf.mxu1 }
 0x240   :  { %v3156_v30 = vadd.f32 %v2460_v29, %v2285_v28 }
 0x241   :  { %v290_v31 = vpop.f32.mrf.mxu1 }
 0x242   :  { %v3158_v32 = vadd.f32 %v2285_v28, %v290_v31 }
 0x247   :  { %v370_v33 = vpop.f32.mrf.mxu1 }
 0x248   :  { %v374_v34 = vadd.f32 %v370_v33, %v3158_v32 }
 0x249   :  { %v2471_v35 = vpop.f32.mrf.mxu1 }
 0x24a   :  { %2676 = vtanh.f32 %v374_v34  ;;  %v2289_v38 = vmul.f32 -1.442695, %v374_v34 }
 0x24c   :  { %2678 = vpow2.f32 %v2289_v38 }
 0x257   :  { %v2677_v36 = vpop.eup %2676 }
 0x258   :  { %388 = vrot.lane.b32.xlu1 %v2677_v36, %s2963_s29 }
 0x259   :  { %v2679_v39 = vpop.eup %2678 }
 0x25a   :  { %v378_v40 = vadd.f32 1.0, %v2679_v39 }
 0x25c   :  { %383 = vrot.lane.b32.xlu1 %v300_v37, %s2963_s29  ;;  %2680 = vrcp.f32 %v378_v40 }
 0x269   :  { %v2681_v41 = vpop.eup %2680 }
 0x2ca   :  { %v389_v42 = vpop.permute.xlu1 %388 }
 0x2cb   :  { %v391_v43 = vmul.f32 %v2681_v41, %v389_v42 }
 0x2cd   :  { %393 = vrot.lane.b32.xlu0 %v391_v43, %s2963_s29 }
 0x2ce   :  { %v384_v44 = vpop.permute.xlu1 %383 }
 0x2cf   :  { %v386_v45 = vmul.f32 %v2681_v41, %v384_v44 }
 0x33f   :  { %v394_v46 = vpop.permute.xlu0 %393 }
 0x340   :  { %v396_v47 = vadd.f32 %v394_v46, %v386_v45 }
 0x342   :  { %2682 = vtanh.f32 %v396_v47  ;;  %v493_v63 = vrot.slane %v396_v47, 6 }
 0x34f   :  { %v2683_v48 = vpop.eup %2682 }
 0x350   :  { %399 = vrot.lane.b32.xlu1 %v2683_v48, %s2963_s29 }
 0x3c2   :  { %v400_v49 = vpop.permute.xlu1 %399 }
 0x3c3   :  { %v402_v50 = vmul.f32 %v2681_v41, %v400_v49 }
 0x3c5   :  { %404 = vrot.lane.b32.xlu0 %v402_v50, %s2964_s17 }
 0x437   :  { %v405_v51 = vpop.permute.xlu0 %404 }
 0x438   :  { %408 = vst.msk [vmem:[#allocation2] sm:$0x3] %vm407_vm6, %v405_v51  ;;  %2481 = vmatmul.mubr.msk.f32.vlgmr.msra.gmra.mxu0 %vm217_vm5, %v405_v51 }
 0x439   :  { %2495 = vmatpush3.msra.mxu0 %v3103_v21  ;;  %2502 = vmatprep.mubr.msk.f32.mxu0 %vm2962_vm4, %v2961_v13 }
 0x43a   :  { %2496 = vmatprep.subr.mxu0 %v2961_v13 }
 0x43b   :  { %2497 = vmatpush3.msra.mxu0 %v3110_v22 }
 0x43c   :  { %2498 = vmatprep.subr.mxu0 %v2961_v13 }
 0x43d   :  { %2499 = vmatpush3.msra.mxu0 %v3116_v23 }
 0x43e   :  { %2500 = vmatprep.subr.mxu0 %v2961_v13 }
 0x43f   :  { %2501 = vmatpush3.msra.mxu0 %v3123_v24 }
 0x440   :  { %2516 = vmatprep.subr.mxu0 %v2961_v13 }
 0x4f8   :  { %v477_v52 = vpop.f32.mrf.mxu0 }
 0x4f9   :  { %v482_v53 = vrot.slane %v477_v52, 6 }
 0x4fa   :  { %v2482_v54 = vpop.f32.mrf.mxu0 }
 0x4fb   :  { %v484_v55 = vadd.f32 %v482_v53, %v3158_v32 }
 0x4fd   :  { %2684 = vtanh.f32 %v484_v55  ;;  %v2291_v57 = vmul.f32 -1.442695, %v484_v55 }
 0x4ff   :  { %2686 = vpow2.f32 %v2291_v57 }
 0x50a   :  { %v2685_v56 = vpop.eup %2684 }
 0x50b   :  { %497 = vrot.lane.b32.xlu1 %v2685_v56, %s2963_s29 }
 0x50c   :  { %v2687_v58 = vpop.eup %2686 }
 0x50d   :  { %v488_v59 = vadd.f32 1.0, %v2687_v58 }
 0x50f   :  { %2688 = vrcp.f32 %v488_v59 }
 0x51c   :  { %v2689_v60 = vpop.eup %2688 }
 0x51d   :  { %v495_v0 = vmul.f32 %v2689_v60, %v493_v63 }
 0x57d   :  { %v498_v61 = vpop.permute.xlu1 %497 }
 0x57e   :  { %v500_v62 = vmul.f32 %v2689_v60, %v498_v61 }
 0x580   :  { %502 = vrot.lane.b32.xlu0 %v500_v62, %s2963_s29 }
 0x5f2   :  { %v503_v1 = vpop.permute.xlu0 %502 }
 0x5f3   :  { %v505_v2 = vadd.f32 %v503_v1, %v495_v0 }
 0x5f5   :  { %2690 = vtanh.f32 %v505_v2  ;;  %v605_v20 = vrot.slane %v505_v2, 6 }
 0x602   :  { %v2691_v3 = vpop.eup %2690 }
 0x603   :  { %508 = vrot.lane.b32.xlu1 %v2691_v3, %s2963_s29 }
 0x675   :  { %v509_v4 = vpop.permute.xlu1 %508 }
 0x676   :  { %v3185_v5 = vmul.f32 %v2689_v60, %v509_v4 }
 0x678   :  { %v518_v6 = vrot.slane %v3185_v5, 2 }
 0x67a   :  { %519 = vrot.lane.b32.xlu0 %v518_v6, %s2964_s17 }
 0x6ec   :  { %v520_v7 = vpop.permute.xlu0 %519 }
 0x6ed   :  { %2492 = vmatmul.mubr.msk.f32.vlgmr.msra.gmra.mxu1 %vm217_vm5, %v520_v7 }
 0x6ee   :  { %2506 = vmatpush3.msra.mxu1 %v3103_v21  ;;  %2513 = vmatprep.mubr.msk.f32.mxu1 %vm2962_vm4, %v2961_v13 }
 0x6ef   :  { %2507 = vmatprep.subr.mxu1 %v2961_v13 }
 0x6f0   :  { %2508 = vmatpush3.msra.mxu1 %v3110_v22 }
 0x6f1   :  { %2509 = vmatprep.subr.mxu1 %v2961_v13 }
 0x6f2   :  { %2510 = vmatpush3.msra.mxu1 %v3116_v23 }
 0x6f3   :  { %2511 = vmatprep.subr.mxu1 %v2961_v13 }
 0x6f4   :  { %2512 = vmatpush3.msra.mxu1 %v3123_v24 }
 0x6f5   :  { %2527 = vmatprep.subr.mxu1 %v2961_v13 }
 0x7ad   :  { %v589_v8 = vpop.f32.mrf.mxu1 }
 0x7ae   :  { %v594_v9 = vrot.slane %v589_v8, 4 }
 0x7af   :  { %v2493_v10 = vpop.f32.mrf.mxu1 }
 0x7b0   :  { %v596_v11 = vadd.f32 %v594_v9, %v3158_v32 }
 0x7b2   :  { %2692 = vtanh.f32 %v596_v11  ;;  %v2293_v14 = vmul.f32 -1.442695, %v596_v11 }
 0x7b4   :  { %2694 = vpow2.f32 %v2293_v14 }
 0x7bf   :  { %v2693_v12 = vpop.eup %2692 }
 0x7c0   :  { %609 = vrot.lane.b32.xlu1 %v2693_v12, %s2963_s29 }
 0x7c1   :  { %v2695_v15 = vpop.eup %2694 }
 0x7c2   :  { %v600_v16 = vadd.f32 1.0, %v2695_v15 }
 0x7c4   :  { %2696 = vrcp.f32 %v600_v16 }
 0x7d1   :  { %v2697_v17 = vpop.eup %2696 }
 0x7d2   :  { %v607_v25 = vmul.f32 %v2697_v17, %v605_v20 }
 0x832   :  { %v610_v18 = vpop.permute.xlu1 %609 }
 0x833   :  { %v612_v19 = vmul.f32 %v2697_v17, %v610_v18 }
 0x835   :  { %614 = vrot.lane.b32.xlu0 %v612_v19, %s2963_s29 }
 0x8a7   :  { %v615_v26 = vpop.permute.xlu0 %614 }
 0x8a8   :  { %v617_v27 = vadd.f32 %v615_v26, %v607_v25 }
 0x8aa   :  { %2698 = vtanh.f32 %v617_v27  ;;  %v717_v46 = vrot.slane %v617_v27, 6 }
 0x8b7   :  { %v2699_v28 = vpop.eup %2698 }
 0x8b8   :  { %620 = vrot.lane.b32.xlu1 %v2699_v28, %s2963_s29 }
 0x92a   :  { %v621_v29 = vpop.permute.xlu1 %620 }
 0x92b   :  { %v3204_v31 = vmul.f32 %v2697_v17, %v621_v29 }
 0x92d   :  { %v630_v33 = vrot.slane %v3204_v31, 4 }
 0x92f   :  { %631 = vrot.lane.b32.xlu0 %v630_v33, %s2964_s17 }
 0x9a1   :  { %v632_v34 = vpop.permute.xlu0 %631 }
 0x9a2   :  { %2503 = vmatmul.mubr.msk.f32.vlgmr.msra.gmra.mxu0 %vm217_vm5, %v632_v34 }
 0x9a3   :  { %2517 = vmatpush3.msra.mxu0 %v3103_v21  ;;  %2524 = vmatprep.mubr.msk.f32.mxu0 %vm2962_vm4, %v2961_v13 }
 0x9a4   :  { %2518 = vmatprep.subr.mxu0 %v2961_v13 }
 0x9a5   :  { %2519 = vmatpush3.msra.mxu0 %v3110_v22 }
 0x9a6   :  { %2520 = vmatprep.subr.mxu0 %v2961_v13 }
 0x9a7   :  { %2521 = vmatpush3.msra.mxu0 %v3116_v23 }
 0x9a8   :  { %2522 = vmatprep.subr.mxu0 %v2961_v13 }
 0x9a9   :  { %2523 = vmatpush3.msra.mxu0 %v3123_v24 }
 0x9aa   :  { %2538 = vmatprep.subr.mxu0 %v2961_v13 }
 0xa62   :  { %v701_v35 = vpop.f32.mrf.mxu0 }
 0xa63   :  { %v706_v36 = vrot.slane %v701_v35, 2 }
 0xa64   :  { %v2504_v37 = vpop.f32.mrf.mxu0 }
 0xa65   :  { %v708_v38 = vadd.f32 %v706_v36, %v3158_v32 }
 0xa67   :  { %2700 = vtanh.f32 %v708_v38  ;;  %v2295_v40 = vmul.f32 -1.442695, %v708_v38 }
 0xa69   :  { %2702 = vpow2.f32 %v2295_v40 }
 0xa74   :  { %v2701_v39 = vpop.eup %2700 }
 0xa75   :  { %721 = vrot.lane.b32.xlu1 %v2701_v39, %s2963_s29 }
 0xa76   :  { %v2703_v41 = vpop.eup %2702 }
 0xa77   :  { %v712_v42 = vadd.f32 1.0, %v2703_v41 }
 0xa79   :  { %2704 = vrcp.f32 %v712_v42 }
 0xa86   :  { %v2705_v43 = vpop.eup %2704 }
 0xa87   :  { %v719_v47 = vmul.f32 %v2705_v43, %v717_v46 }
 0xae7   :  { %v722_v44 = vpop.permute.xlu1 %721 }
 0xae8   :  { %v724_v45 = vmul.f32 %v2705_v43, %v722_v44 }
 0xaea   :  { %726 = vrot.lane.b32.xlu0 %v724_v45, %s2963_s29 }
 0xb5c   :  { %v727_v48 = vpop.permute.xlu0 %726 }
 0xb5d   :  { %v729_v49 = vadd.f32 %v727_v48, %v719_v47 }
 0xb5f   :  { %2706 = vtanh.f32 %v729_v49  ;;  %v826_v0 = vrot.slane %v729_v49, 6 }
 0xb6c   :  { %v2707_v32 = vpop.eup %2706 }
 0xb6d   :  { %732 = vrot.lane.b32.xlu1 %v2707_v32, %s2963_s29 }
 0xbdf   :  { %v733_v50 = vpop.permute.xlu1 %732 }
 0xbe0   :  { %v3223_v51 = vmul.f32 %v2705_v43, %v733_v50 }
 0xbe2   :  { %v742_v52 = vrot.slane %v3223_v51, 6 }
 0xbe4   :  { %743 = vrot.lane.b32.xlu0 %v742_v52, %s2964_s17 }
 0xc56   :  { %v744_v53 = vpop.permute.xlu0 %743 }
 0xc57   :  { %2514 = vmatmul.mubr.msk.f32.vlgmr.msra.gmra.mxu1 %vm217_vm5, %v744_v53 }
 0xc58   :  { %2528 = vmatpush3.msra.mxu1 %v3103_v21  ;;  %2535 = vmatprep.mubr.msk.f32.mxu1 %vm2962_vm4, %v2961_v13 }
 0xc59   :  { %2529 = vmatprep.subr.mxu1 %v2961_v13 }
 0xc5a   :  { %2530 = vmatpush3.msra.mxu1 %v3110_v22 }
 0xc5b   :  { %2531 = vmatprep.subr.mxu1 %v2961_v13 }
 0xc5c   :  { %2532 = vmatpush3.msra.mxu1 %v3116_v23 }
 0xc5d   :  { %2533 = vmatprep.subr.mxu1 %v2961_v13 }
 0xc5e   :  { %2534 = vmatpush3.msra.mxu1 %v3123_v24 }
 0xd17   :  { %v813_v54 = vpop.f32.mrf.mxu1 }
 0xd18   :  { %v817_v55 = vadd.f32 %v813_v54, %v3156_v30 }
 0xd19   :  { %v2515_v56 = vpop.f32.mrf.mxu1 }
 0xd1a   :  { %2708 = vtanh.f32 %v817_v55  ;;  %v2297_v58 = vmul.f32 -1.442695, %v817_v55 }
 0xd1c   :  { %2710 = vpow2.f32 %v2297_v58 }
 0xd27   :  { %v2709_v57 = vpop.eup %2708 }
 0xd28   :  { %830 = vrot.lane.b32.xlu1 %v2709_v57, %s2963_s29 }
 0xd29   :  { %v2711_v59 = vpop.eup %2710 }
 0xd2a   :  { %v821_v60 = vadd.f32 1.0, %v2711_v59 }
 0xd2c   :  { %2712 = vrcp.f32 %v821_v60 }
 0xd39   :  { %v2713_v61 = vpop.eup %2712 }
 0xd3a   :  { %v828_v1 = vmul.f32 %v2713_v61, %v826_v0 }
 0xd9a   :  { %v831_v62 = vpop.permute.xlu1 %830 }
 0xd9b   :  { %v833_v63 = vmul.f32 %v2713_v61, %v831_v62 }
 0xd9d   :  { %835 = vrot.lane.b32.xlu0 %v833_v63, %s2963_s29 }
 0xe0f   :  { %v836_v2 = vpop.permute.xlu0 %835 }
 0xe10   :  { %v838_v3 = vadd.f32 %v836_v2, %v828_v1 }
 0xe12   :  { %2714 = vtanh.f32 %v838_v3 }
 0xe1f   :  { %v2715_v4 = vpop.eup %2714 }
 0xe20   :  { %841 = vrot.lane.b32.xlu1 %v2715_v4, %s2963_s29 }
 0xe92   :  { %v842_v6 = vpop.permute.xlu1 %841 }
 0xe93   :  { %v844_v7 = vmul.f32 %v2713_v61, %v842_v6  ;;  %v1189_v6 = vld [vmem:[%s3495_s5 + $0x18] sm:$0xff] }
 0xe94   :  { %2549 = vmatprep.subr.mxu1 %v1189_v6 }
 0xe95   :  { %846 = vrot.lane.b32.xlu0 %v844_v7, %s2964_s17  ;;  %v1188_v7 = vld [vmem:[%s3495_s5 + $0x10] sm:$0xff] }
 0xf07   :  { %v847_v8 = vpop.permute.xlu0 %846 }
 0xf08   :  { %849 = vst.msk [vmem:[#allocation2 + $0x8] sm:$0x3] %vm407_vm6, %v847_v8  ;;  %2525 = vmatmul.mubr.msk.f32.vlgmr.msra.gmra.mxu0 %vm217_vm5, %v847_v8  ;;  %v3299_v8 = vld [vmem:[%s3497_s7 + $0x18] sm:$0xff] }
 0xf09   :  { %2539 = vmatpush3.msra.mxu0 %v3103_v21  ;;  %2546 = vmatprep.mubr.msk.f32.mxu0 %vm2962_vm4, %v2961_v13 }
 0xf0a   :  { %2540 = vmatprep.subr.mxu0 %v2961_v13 }
 0xf0b   :  { %2541 = vmatpush3.msra.mxu0 %v3110_v22 }
 0xf0c   :  { %2542 = vmatprep.subr.mxu0 %v2961_v13 }
 0xf0d   :  { %2543 = vmatpush3.msra.mxu0 %v3116_v23 }
 0xf0e   :  { %2544 = vmatprep.subr.mxu0 %v2961_v13 }
 0xf0f   :  { %2545 = vmatpush3.msra.mxu0 %v3123_v24  ;;  %v934_v24 = vrot.slane %v838_v3, 6 }
 0xf10   :  { %2560 = vmatprep.subr.mxu0 %v2961_v13 }
 0xfc8   :  { %v918_v9 = vpop.f32.mrf.mxu0 }
 0xfc9   :  { %v923_v10 = vrot.slane %v918_v9, 6  ;;  %v3308_v9 = vld [vmem:[%s3497_s7 + $0x10] sm:$0xff] }
 0xfca   :  { %v2526_v21 = vpop.f32.mrf.mxu0 }
 0xfcb   :  { %v925_v11 = vadd.f32 %v923_v10, %v3156_v30  ;;  %v3314_v10 = vld [vmem:[%s3497_s7 + $0x8] sm:$0xff]  ;;  %v1186_v21 = vld [vmem:[%s3495_s5] sm:$0xff] }
 0xfcd   :  { %2716 = vtanh.f32 %v925_v11  ;;  %v2299_v22 = vmul.f32 -1.442695, %v925_v11  ;;  %v3326_v11 = vld [vmem:[%s3497_s7] sm:$0xff]  ;;  %s2966_s7 = smov [#allocation12]  }
 0xfce   :  { %s2249_s6 = sshll.u32 %s2966_s7, 4  ;;  %s2250_s6 = int_to_ptr.vmem [resolvable:$true] %s2249_s6 }
 0xfcf   :  { %2718 = vpow2.f32 %v2299_v22  ;;  %s2884_s28 = scalar_lea.vmem %s2250_s6, 64  ;;  %p2889_p7 = scmp.lt.s32.totalorder %s2250_s6, %s2250_s6 }
 0xfd0   :  { %p2885_p6 = scmp.ne.s32.totalorder %s2250_s6, %s2884_s28  ;;  %p2890_p8 = scmp.lt.s32.totalorder %s2884_s28, %s2884_s28 }
 0xfd2   :  { %p2891_p9 = por %p2890_p8, %p2889_p7 }
 0xfd4   :  { %p2892_p10 = pnand %p2891_p9, %p2885_p6 }
 0xfda   :  { %v2717_v12 = vpop.eup %2716 }
 0xfdb   :  { %938 = vrot.lane.b32.xlu1 %v2717_v12, %s2963_s29  ;;  %v2307_v12 = vld [vmem:[%s3492_s2 + $0x2] sm:$0x3] }
 0xfdc   :  { %v2719_v14 = vpop.eup %2718 }
 0xfdd   :  { %v929_v15 = vadd.f32 1.0, %v2719_v14 }
 0xfdf   :  { %2720 = vrcp.f32 %v929_v15 }
 0xfec   :  { %v2721_v23 = vpop.eup %2720 }
 0xfed   :  { %v936_v18 = vmul.f32 %v2721_v23, %v934_v24 }
0x104d   :  { %v939_v16 = vpop.permute.xlu1 %938 }
0x104e   :  { %v941_v17 = vmul.f32 %v2721_v23, %v939_v16 }
0x1050   :  { %943 = vrot.lane.b32.xlu0 %v941_v17, %s2963_s29 }
0x10c2   :  { %v944_v19 = vpop.permute.xlu0 %943 }
0x10c3   :  { %v946_v20 = vadd.f32 %v944_v19, %v936_v18 }
0x10c5   :  { %2722 = vtanh.f32 %v946_v20  ;;  %v1045_v44 = vrot.slane %v946_v20, 6 }
0x10d2   :  { %v2723_v25 = vpop.eup %2722 }
0x10d3   :  { %949 = vrot.lane.b32.xlu1 %v2723_v25, %s2963_s29  ;;  %v2304_v25 = vld [vmem:[#allocation6] ss:$0 sm:$0xff] }
0x1145   :  { %v950_v26 = vpop.permute.xlu1 %949 }
0x1146   :  { %v3258_v27 = vmul.f32 %v2721_v23, %v950_v26  ;;  %v2308_v23 = vld [vmem:[%s3493_s3 + $0x2] sm:$0x3]  ;;  %s2965_s3 = smov 96  }
0x1148   :  { %v958_v28 = vrot.slane %v3258_v27, 2 }
0x114a   :  { %959 = vrot.lane.b32.xlu0 %v958_v28, %s2964_s17 }
0x11bc   :  { %v960_v29 = vpop.permute.xlu0 %959 }
0x11bd   :  { %2536 = vmatmul.mubr.msk.f32.vlgmr.msra.gmra.mxu1 %vm217_vm5, %v960_v29 }
0x11be   :  { %2550 = vmatpush3.msra.mxu1 %v1189_v6 }
0x11bf   :  { %2551 = vmatprep.subr.mxu1 %v1188_v7 }
0x11c0   :  { %2552 = vmatpush3.msra.mxu1 %v1188_v7 }
0x127d   :  { %v1029_v33 = vpop.f32.mrf.mxu1 }
0x127e   :  { %v1034_v34 = vrot.slane %v1029_v33, 4 }
0x127f   :  { %v2537_v35 = vpop.f32.mrf.mxu1 }
0x1280   :  { %v1036_v36 = vadd.f32 %v1034_v34, %v3156_v30 }
0x1282   :  { %2724 = vtanh.f32 %v1036_v36  ;;  %v2301_v38 = vmul.f32 -1.442695, %v1036_v36 }
0x1284   :  { %2726 = vpow2.f32 %v2301_v38 }
0x128f   :  { %v2725_v37 = vpop.eup %2724 }
0x1290   :  { %1049 = vrot.lane.b32.xlu1 %v2725_v37, %s2963_s29 }
0x1291   :  { %v2727_v39 = vpop.eup %2726 }
0x1292   :  { %v1040_v40 = vadd.f32 1.0, %v2727_v39 }
0x1294   :  { %2728 = vrcp.f32 %v1040_v40 }
0x12a1   :  { %v2729_v41 = vpop.eup %2728 }
0x12a2   :  { %v1047_v45 = vmul.f32 %v2729_v41, %v1045_v44 }
0x1302   :  { %v1050_v42 = vpop.permute.xlu1 %1049 }
0x1303   :  { %v1052_v43 = vmul.f32 %v2729_v41, %v1050_v42 }
0x1305   :  { %1054 = vrot.lane.b32.xlu0 %v1052_v43, %s2963_s29 }
0x1377   :  { %v1055_v46 = vpop.permute.xlu0 %1054 }
0x1378   :  { %v1057_v47 = vadd.f32 %v1055_v46, %v1047_v45 }
0x137a   :  { %2730 = vtanh.f32 %v1057_v47 }
0x1387   :  { %v2731_v48 = vpop.eup %2730 }
0x1388   :  { %1060 = vrot.lane.b32.xlu1 %v2731_v48, %s2963_s29 }
0x13fa   :  { %v1061_v49 = vpop.permute.xlu1 %1060 }
0x13fb   :  { %v1063_v32 = vmul.f32 %v2729_v41, %v1061_v49 }
0x13fd   :  { %v1069_v50 = vrot.slane %v1063_v32, 4 }
0x13ff   :  { %1070 = vrot.lane.b32.xlu0 %v1069_v50, %s2964_s17 }
0x1471   :  { %v1071_v52 = vpop.permute.xlu0 %1070 }
0x1472   :  { %2547 = vmatmul.mubr.msk.f32.vlgmr.msra.gmra.mxu0 %vm217_vm5, %v1071_v52 }
0x1473   :  { %2568 = vmatprep.mubr.msk.f32.mxu0 %vm2962_vm4, %v2961_v13  ;;  %2561 = vmatpush3.msra.mxu0 %v3299_v8 }
0x1474   :  { %2562 = vmatprep.subr.mxu0 %v2961_v13 }
0x1475   :  { %2563 = vmatpush3.msra.mxu0 %v3308_v9 }
0x1476   :  { %2564 = vmatprep.subr.mxu0 %v2961_v13 }
0x1477   :  { %2565 = vmatpush3.msra.mxu0 %v3314_v10 }
0x1478   :  { %2566 = vmatprep.subr.mxu0 %v2961_v13 }
0x1479   :  { %2567 = vmatpush3.msra.mxu0 %v3326_v11 }
0x147a   :  { %2569 = vmatmul.mubr.msk.f32.vlgmr.msra.gmra.mxu0 %vm217_vm5, %v2307_v12  ;;  %2582 = vmatprep.subr.mxu0 %v2961_v13 }
0x147b   :  { %2583 = vmatpush3.msra.mxu0 %v3299_v8  ;;  %2590 = vmatprep.mubr.msk.f32.mxu0 %vm2962_vm4, %v2961_v13 }
0x147c   :  { %2584 = vmatprep.subr.mxu0 %v2961_v13 }
0x147d   :  { %2585 = vmatpush3.msra.mxu0 %v3308_v9 }
0x147e   :  { %2586 = vmatprep.subr.mxu0 %v2961_v13 }
0x147f   :  { %2587 = vmatpush3.msra.mxu0 %v3314_v10 }
0x1480   :  { %2588 = vmatprep.subr.mxu0 %v2961_v13 }
0x1481   :  { %2589 = vmatpush3.msra.mxu0 %v3326_v11 }
0x1482   :  { %2604 = vmatprep.subr.mxu0 %v2961_v13 }
0x1532   :  { %v1140_v53 = vpop.f32.mrf.mxu0 }
0x1533   :  { %v1145_v54 = vrot.slane %v1140_v53, 2 }
0x1534   :  { %v2548_v55 = vpop.f32.mrf.mxu0 }
0x1535   :  { %v1147_v56 = vadd.f32 %v1145_v54, %v3156_v30  ;;  %v1156_v30 = vrot.slane %v1057_v47, 6 }
0x1537   :  { %2732 = vtanh.f32 %v1147_v56  ;;  %v2303_v58 = vmul.f32 -1.442695, %v1147_v56 }
0x1539   :  { %2734 = vpow2.f32 %v2303_v58 }
0x153a   :  { %v1357_v19 = vpop.f32.mrf.mxu0 }
0x153c   :  { %v2570_v20 = vpop.f32.mrf.mxu0 }
0x1544   :  { %v2733_v57 = vpop.eup %2732 }
0x1545   :  { %1160 = vrot.lane.b32.xlu1 %v2733_v57, %s2963_s29 }
0x1546   :  { %v2735_v59 = vpop.eup %2734 }
0x1547   :  { %v1151_v60 = vadd.f32 1.0, %v2735_v59 }
0x1549   :  { %2736 = vrcp.f32 %v1151_v60 }
0x1556   :  { %v2737_v61 = vpop.eup %2736 }
0x1557   :  { %v1158_v0 = vmul.f32 %v2737_v61, %v1156_v30 }
0x15b7   :  { %v1161_v62 = vpop.permute.xlu1 %1160 }
0x15b8   :  { %v1163_v63 = vmul.f32 %v2737_v61, %v1161_v62 }
0x15ba   :  { %1165 = vrot.lane.b32.xlu0 %v1163_v63, %s2963_s29 }
0x15be   :  { %513 = vrot.lane.b32.xlu0 %v3185_v5, %s2964_s17 }
0x15c2   :  { %737 = vrot.lane.b32.xlu0 %v3223_v51, %s2964_s17 }
0x15c6   :  { %1065 = vrot.lane.b32.xlu0 %v1063_v32, %s2964_s17 }
0x162c   :  { %v1166_v1 = vpop.permute.xlu0 %1165 }
0x162d   :  { %v3279_v2 = vadd.f32 %v1166_v1, %v1158_v0 }
0x162f   :  { %2738 = vtanh.f32 %v3279_v2 }
0x1630   :  { %v514_v3 = vpop.permute.xlu0 %513 }
0x1631   :  { %517 = vst.msk [vmem:[#allocation2] sm:$0xc] %vm516_vm7, %v514_v3 }
0x1634   :  { %v738_v4 = vpop.permute.xlu0 %737 }
0x1635   :  { %741 = vst.msk [vmem:[#allocation2] sm:$0xc0] %vm740_vm8, %v738_v4 }
0x1638   :  { %v1066_v5 = vpop.permute.xlu0 %1065 }
0x1639   :  { %1068 = vst.msk [vmem:[#allocation2 + $0x8] sm:$0x30] %vm628_vm9, %v1066_v5 }
0x163c   :  { %v2739_v51 = vpop.eup %2738 }
0x163d   :  { %1171 = vrot.lane.b32.xlu1 %v2739_v51, %s2963_s29 }
0x1641   :  { %625 = vrot.lane.b32.xlu1 %v3204_v31, %s2964_s17  ;;  %v1187_v31 = vld [vmem:[%s3495_s5 + $0x8] sm:$0xff] }
0x1642   :  { %2553 = vmatprep.subr.mxu1 %v1187_v31 }
0x1643   :  { %2554 = vmatpush3.msra.mxu1 %v1187_v31 }
0x1644   :  { %2555 = vmatprep.subr.mxu1 %v1186_v21 }
0x1645   :  { %954 = vrot.lane.b32.xlu1 %v3258_v27, %s2964_s17  ;;  %2556 = vmatpush3.msra.mxu1 %v1186_v21 }
0x1646   :  { %2571 = vmatprep.subr.mxu1 %v2961_v13 }
0x16af   :  { %v1172_v22 = vpop.permute.xlu1 %1171 }
0x16b0   :  { %v1174_v14 = vmul.f32 %v2737_v61, %v1172_v22 }
0x16b2   :  { %1176 = vrot.lane.b32.xlu1 %v1174_v14, %s2964_s17 }
0x16b3   :  { %v626_v15 = vpop.permute.xlu1 %625 }
0x16b4   :  { %629 = vst.msk [vmem:[#allocation2] sm:$0x30] %vm628_vm9, %v626_v15 }
0x16b6   :  { %1370 = vrot.lane.b32.xlu1 %v2308_v23, %s2963_s29 }
0x16b7   :  { %v955_v16 = vpop.permute.xlu1 %954 }
0x16b8   :  { %957 = vst.msk [vmem:[#allocation2 + $0x8] sm:$0xc] %vm516_vm7, %v955_v16 }
0x16bb   :  { %v1195_v17 = vld [vmem:[#allocation2] sm:$0xff] }
0x16bc   :  { %2557 = vmatprep.mubr.msk.f32.mxu1 %vm217_vm5, %v1195_v17 }
0x1724   :  { %v1177_v24 = vpop.permute.xlu1 %1176 }
0x1725   :  { %1179 = vst.msk [vmem:[#allocation2 + $0x8] sm:$0xc0] %vm740_vm8, %v1177_v24  ;;  %1180 = vst.msk [vmem:[#allocation12 - $0x6] sm:$0xc0] %vm740_vm8, %v1177_v24 }
0x1728   :  { %v1371_v41 = vpop.permute.xlu1 %1370 }
0x172c   :  { %v1196_v18 = vld [vmem:[#allocation2 + $0x8] sm:$0xff] }
0x172d   :  { %2558 = vmatmul.mubr.msk.f32.vlgmr.msra.gmra.mxu1 %vm217_vm5, %v1196_v18 }
0x172e   :  { %2572 = vmatpush3.msra.mxu1 %v3299_v8  ;;  %2579 = vmatprep.mubr.msk.f32.mxu1 %vm2962_vm4, %v2961_v13 }
0x172f   :  { %2573 = vmatprep.subr.mxu1 %v2961_v13 }
0x1730   :  { %2574 = vmatpush3.msra.mxu1 %v3308_v9 }
0x1731   :  { %2575 = vmatprep.subr.mxu1 %v2961_v13 }
0x1732   :  { %2576 = vmatpush3.msra.mxu1 %v3314_v10 }
0x1733   :  { %2577 = vmatprep.subr.mxu1 %v2961_v13 }
0x1734   :  { %2578 = vmatpush3.msra.mxu1 %v3326_v11 }
0x1735   :  { %2593 = vmatprep.subr.mxu1 %v2961_v13 }
0x17ed   :  { %v2559_v26 = vpop.f32.mrf.mxu1 }
0x17ee   :  { %v3366_v27 = vadd.f32 %v2559_v26, %v2304_v25 }
0x17ef   :  { %v1275_v28 = vpop.f32.mrf.mxu1 }
0x17f0   :  { %v3368_v29 = vadd.f32 %v2304_v25, %v1275_v28 }
0x17f2   :  { %v1361_v33 = vadd.f32 %v1357_v19, %v3368_v29 }
0x17f4   :  { %2740 = vtanh.f32 %v1361_v33  ;;  %v2310_v35 = vmul.f32 -1.442695, %v1361_v33 }
0x17f6   :  { %2742 = vpow2.f32 %v2310_v35 }
0x1801   :  { %v2741_v34 = vpop.eup %2740 }
0x1802   :  { %1375 = vrot.lane.b32.xlu0 %v2741_v34, %s2963_s29 }
0x1803   :  { %v2743_v36 = vpop.eup %2742 }
0x1804   :  { %v1365_v37 = vadd.f32 1.0, %v2743_v36 }
0x1806   :  { %2744 = vrcp.f32 %v1365_v37 }
0x1813   :  { %v2745_v38 = vpop.eup %2744 }
0x1814   :  { %v1373_v42 = vmul.f32 %v2745_v38, %v1371_v41 }
0x1874   :  { %v1376_v39 = vpop.permute.xlu0 %1375 }
0x1875   :  { %v1378_v40 = vmul.f32 %v2745_v38, %v1376_v39 }
0x1877   :  { %1380 = vrot.lane.b32.xlu0 %v1378_v40, %s2963_s29 }
0x18e9   :  { %v1381_v43 = vpop.permute.xlu0 %1380 }
0x18ea   :  { %v1383_v44 = vadd.f32 %v1381_v43, %v1373_v42 }
0x18ec   :  { %2746 = vtanh.f32 %v1383_v44  ;;  %v1477_v60 = vrot.slane %v1383_v44, 6 }
0x18f9   :  { %v2747_v45 = vpop.eup %2746 }
0x18fa   :  { %1386 = vrot.lane.b32.xlu1 %v2747_v45, %s2963_s29 }
0x196c   :  { %v1387_v46 = vpop.permute.xlu1 %1386 }
0x196d   :  { %v1389_v47 = vmul.f32 %v2745_v38, %v1387_v46 }
0x196f   :  { %1391 = vrot.lane.b32.xlu0 %v1389_v47, %s2964_s17 }
0x19e1   :  { %v1392_v48 = vpop.permute.xlu0 %1391 }
0x19e2   :  { %2580 = vmatmul.mubr.msk.f32.vlgmr.msra.gmra.mxu1 %vm217_vm5, %v1392_v48 }
0x19e3   :  { %2594 = vmatpush3.msra.mxu1 %v3299_v8  ;;  %2601 = vmatprep.mubr.msk.f32.mxu1 %vm2962_vm4, %v2961_v13 }
0x19e4   :  { %2595 = vmatprep.subr.mxu1 %v2961_v13 }
0x19e5   :  { %2596 = vmatpush3.msra.mxu1 %v3308_v9 }
0x19e6   :  { %2597 = vmatprep.subr.mxu1 %v2961_v13 }
0x19e7   :  { %2598 = vmatpush3.msra.mxu1 %v3314_v10 }
0x19e8   :  { %2599 = vmatprep.subr.mxu1 %v2961_v13 }
0x19e9   :  { %2600 = vmatpush3.msra.mxu1 %v3326_v11 }
0x19ea   :  { %2615 = vmatprep.subr.mxu1 %v2961_v13 }
0x1aa2   :  { %v1461_v49 = vpop.f32.mrf.mxu1 }
0x1aa3   :  { %v1466_v32 = vrot.slane %v1461_v49, 6 }
0x1aa4   :  { %v2581_v50 = vpop.f32.mrf.mxu1 }
0x1aa5   :  { %v1468_v52 = vadd.f32 %v1466_v32, %v3368_v29 }
0x1aa7   :  { %2748 = vtanh.f32 %v1468_v52  ;;  %v2312_v54 = vmul.f32 -1.442695, %v1468_v52 }
0x1aa9   :  { %2750 = vpow2.f32 %v2312_v54 }
0x1ab4   :  { %v2749_v53 = vpop.eup %2748 }
0x1ab5   :  { %1481 = vrot.lane.b32.xlu1 %v2749_v53, %s2963_s29 }
0x1ab6   :  { %v2751_v55 = vpop.eup %2750 }
0x1ab7   :  { %v1472_v56 = vadd.f32 1.0, %v2751_v55 }
0x1ab9   :  { %2752 = vrcp.f32 %v1472_v56 }
0x1ac6   :  { %v2753_v57 = vpop.eup %2752 }
0x1ac7   :  { %v1479_v61 = vmul.f32 %v2753_v57, %v1477_v60 }
0x1b27   :  { %v1482_v58 = vpop.permute.xlu1 %1481 }
0x1b28   :  { %v1484_v59 = vmul.f32 %v2753_v57, %v1482_v58 }
0x1b2a   :  { %1486 = vrot.lane.b32.xlu0 %v1484_v59, %s2963_s29 }
0x1b9c   :  { %v1487_v62 = vpop.permute.xlu0 %1486 }
0x1b9d   :  { %v1489_v63 = vadd.f32 %v1487_v62, %v1479_v61 }
0x1b9f   :  { %2754 = vtanh.f32 %v1489_v63  ;;  %v1584_v16 = vrot.slane %v1489_v63, 6 }
0x1bac   :  { %v2755_v30 = vpop.eup %2754 }
0x1bad   :  { %1492 = vrot.lane.b32.xlu1 %v2755_v30, %s2963_s29 }
0x1c1f   :  { %v1493_v0 = vpop.permute.xlu1 %1492 }
0x1c20   :  { %v1495_v1 = vmul.f32 %v2753_v57, %v1493_v0 }
0x1c22   :  { %v1497_v3 = vrot.slane %v1495_v1, 2 }
0x1c24   :  { %1498 = vrot.lane.b32.xlu0 %v1497_v3, %s2964_s17 }
0x1c96   :  { %v1499_v4 = vpop.permute.xlu0 %1498 }
0x1c97   :  { %2591 = vmatmul.mubr.msk.f32.vlgmr.msra.gmra.mxu0 %vm217_vm5, %v1499_v4 }
0x1c98   :  { %2605 = vmatpush3.msra.mxu0 %v3299_v8  ;;  %2612 = vmatprep.mubr.msk.f32.mxu0 %vm2962_vm4, %v2961_v13 }
0x1c99   :  { %2606 = vmatprep.subr.mxu0 %v2961_v13 }
0x1c9a   :  { %2607 = vmatpush3.msra.mxu0 %v3308_v9 }
0x1c9b   :  { %2608 = vmatprep.subr.mxu0 %v2961_v13 }
0x1c9c   :  { %2609 = vmatpush3.msra.mxu0 %v3314_v10 }
0x1c9d   :  { %2610 = vmatprep.subr.mxu0 %v2961_v13 }
0x1c9e   :  { %2611 = vmatpush3.msra.mxu0 %v3326_v11 }
0x1c9f   :  { %2626 = vmatprep.subr.mxu0 %v2961_v13 }
0x1d57   :  { %v1568_v5 = vpop.f32.mrf.mxu0 }
0x1d58   :  { %v1573_v51 = vrot.slane %v1568_v5, 4 }
0x1d59   :  { %v2592_v6 = vpop.f32.mrf.mxu0 }
0x1d5a   :  { %v1575_v7 = vadd.f32 %v1573_v51, %v3368_v29 }
0x1d5c   :  { %2756 = vtanh.f32 %v1575_v7  ;;  %v2314_v21 = vmul.f32 -1.442695, %v1575_v7 }
0x1d5e   :  { %2758 = vpow2.f32 %v2314_v21 }
0x1d69   :  { %v2757_v31 = vpop.eup %2756 }
0x1d6a   :  { %1588 = vrot.lane.b32.xlu1 %v2757_v31, %s2963_s29 }
0x1d6b   :  { %v2759_v12 = vpop.eup %2758 }
0x1d6c   :  { %v1579_v22 = vadd.f32 1.0, %v2759_v12 }
0x1d6e   :  { %2760 = vrcp.f32 %v1579_v22 }
0x1d7b   :  { %v2761_v14 = vpop.eup %2760 }
0x1d7c   :  { %v1586_v17 = vmul.f32 %v2761_v14, %v1584_v16 }
0x1ddc   :  { %v1589_v15 = vpop.permute.xlu1 %1588 }
0x1ddd   :  { %v1591_v23 = vmul.f32 %v2761_v14, %v1589_v15 }
0x1ddf   :  { %1593 = vrot.lane.b32.xlu0 %v1591_v23, %s2963_s29 }
0x1e51   :  { %v1594_v24 = vpop.permute.xlu0 %1593 }
0x1e52   :  { %v1596_v18 = vadd.f32 %v1594_v24, %v1586_v17 }
0x1e54   :  { %2762 = vtanh.f32 %v1596_v18  ;;  %v1691_v44 = vrot.slane %v1596_v18, 6 }
0x1e61   :  { %v2763_v19 = vpop.eup %2762 }
0x1e62   :  { %1599 = vrot.lane.b32.xlu1 %v2763_v19, %s2963_s29 }
0x1ed4   :  { %v1600_v20 = vpop.permute.xlu1 %1599 }
0x1ed5   :  { %v1602_v25 = vmul.f32 %v2761_v14, %v1600_v20 }
0x1ed7   :  { %v1604_v26 = vrot.slane %v1602_v25, 4 }
0x1ed9   :  { %1605 = vrot.lane.b32.xlu0 %v1604_v26, %s2964_s17 }
0x1f4b   :  { %v1606_v28 = vpop.permute.xlu0 %1605 }
0x1f4c   :  { %2602 = vmatmul.mubr.msk.f32.vlgmr.msra.gmra.mxu1 %vm217_vm5, %v1606_v28 }
0x1f4d   :  { %2616 = vmatpush3.msra.mxu1 %v3299_v8  ;;  %2623 = vmatprep.mubr.msk.f32.mxu1 %vm2962_vm4, %v2961_v13 }
0x1f4e   :  { %2617 = vmatprep.subr.mxu1 %v2961_v13 }
0x1f4f   :  { %2618 = vmatpush3.msra.mxu1 %v3308_v9 }
0x1f50   :  { %2619 = vmatprep.subr.mxu1 %v2961_v13 }
0x1f51   :  { %2620 = vmatpush3.msra.mxu1 %v3314_v10 }
0x1f52   :  { %2621 = vmatprep.subr.mxu1 %v2961_v13 }
0x1f53   :  { %2622 = vmatpush3.msra.mxu1 %v3326_v11 }
0x1f54   :  { %2637 = vmatprep.subr.mxu1 %v2961_v13 }
0x200c   :  { %v1675_v33 = vpop.f32.mrf.mxu1 }
0x200d   :  { %v1680_v34 = vrot.slane %v1675_v33, 2 }
0x200e   :  { %v2603_v35 = vpop.f32.mrf.mxu1 }
0x200f   :  { %v1682_v36 = vadd.f32 %v1680_v34, %v3368_v29 }
0x2011   :  { %2764 = vtanh.f32 %v1682_v36  ;;  %v2316_v38 = vmul.f32 -1.442695, %v1682_v36 }
0x2013   :  { %2766 = vpow2.f32 %v2316_v38 }
0x201e   :  { %v2765_v37 = vpop.eup %2764 }
0x201f   :  { %1695 = vrot.lane.b32.xlu1 %v2765_v37, %s2963_s29 }
0x2020   :  { %v2767_v39 = vpop.eup %2766 }
0x2021   :  { %v1686_v40 = vadd.f32 1.0, %v2767_v39 }
0x2023   :  { %2768 = vrcp.f32 %v1686_v40 }
0x2030   :  { %v2769_v41 = vpop.eup %2768 }
0x2031   :  { %v1693_v45 = vmul.f32 %v2769_v41, %v1691_v44 }
0x2091   :  { %v1696_v42 = vpop.permute.xlu1 %1695 }
0x2092   :  { %v1698_v43 = vmul.f32 %v2769_v41, %v1696_v42 }
0x2094   :  { %1700 = vrot.lane.b32.xlu0 %v1698_v43, %s2963_s29 }
0x2106   :  { %v1701_v46 = vpop.permute.xlu0 %1700 }
0x2107   :  { %v1703_v47 = vadd.f32 %v1701_v46, %v1693_v45 }
0x2109   :  { %2770 = vtanh.f32 %v1703_v47  ;;  %v1795_v62 = vrot.slane %v1703_v47, 6 }
0x2116   :  { %v2771_v29 = vpop.eup %2770 }
0x2117   :  { %1706 = vrot.lane.b32.xlu1 %v2771_v29, %s2963_s29 }
0x2189   :  { %v1707_v48 = vpop.permute.xlu1 %1706 }
0x218a   :  { %v1709_v49 = vmul.f32 %v2769_v41, %v1707_v48 }
0x218c   :  { %v1711_v32 = vrot.slane %v1709_v49, 6 }
0x218e   :  { %1712 = vrot.lane.b32.xlu0 %v1711_v32, %s2964_s17 }
0x2200   :  { %v1713_v50 = vpop.permute.xlu0 %1712 }
0x2201   :  { %2613 = vmatmul.mubr.msk.f32.vlgmr.msra.gmra.mxu0 %vm217_vm5, %v1713_v50 }
0x2202   :  { %2627 = vmatpush3.msra.mxu0 %v3299_v8  ;;  %2634 = vmatprep.mubr.msk.f32.mxu0 %vm2962_vm4, %v2961_v13 }
0x2203   :  { %2628 = vmatprep.subr.mxu0 %v2961_v13 }
0x2204   :  { %2629 = vmatpush3.msra.mxu0 %v3308_v9 }
0x2205   :  { %2630 = vmatprep.subr.mxu0 %v2961_v13 }
0x2206   :  { %2631 = vmatpush3.msra.mxu0 %v3314_v10 }
0x2207   :  { %2632 = vmatprep.subr.mxu0 %v2961_v13 }
0x2208   :  { %2633 = vmatpush3.msra.mxu0 %v3326_v11 }
0x2209   :  { %2648 = vmatprep.subr.mxu0 %v2961_v13 }
0x22c1   :  { %v1782_v52 = vpop.f32.mrf.mxu0 }
0x22c2   :  { %v1786_v53 = vadd.f32 %v1782_v52, %v3366_v27 }
0x22c3   :  { %v2614_v54 = vpop.f32.mrf.mxu0 }
0x22c4   :  { %2772 = vtanh.f32 %v1786_v53  ;;  %v2318_v56 = vmul.f32 -1.442695, %v1786_v53 }
0x22c6   :  { %2774 = vpow2.f32 %v2318_v56 }
0x22d1   :  { %v2773_v55 = vpop.eup %2772 }
0x22d2   :  { %1799 = vrot.lane.b32.xlu1 %v2773_v55, %s2963_s29 }
0x22d3   :  { %v2775_v57 = vpop.eup %2774 }
0x22d4   :  { %v1790_v58 = vadd.f32 1.0, %v2775_v57 }
0x22d6   :  { %2776 = vrcp.f32 %v1790_v58 }
0x22e3   :  { %v2777_v59 = vpop.eup %2776 }
0x22e4   :  { %v1797_v63 = vmul.f32 %v2777_v59, %v1795_v62 }
0x2344   :  { %v1800_v60 = vpop.permute.xlu1 %1799 }
0x2345   :  { %v1802_v61 = vmul.f32 %v2777_v59, %v1800_v60 }
0x2347   :  { %1804 = vrot.lane.b32.xlu0 %v1802_v61, %s2963_s29 }
0x23b9   :  { %v1805_v30 = vpop.permute.xlu0 %1804 }
0x23ba   :  { %v1807_v0 = vadd.f32 %v1805_v30, %v1797_v63  ;;  %v2148_v30 = vld [vmem:[#allocation8 + $0x10] sm:$0xff] }
0x23bc   :  { %2778 = vtanh.f32 %v1807_v0 }
0x23c9   :  { %v2779_v1 = vpop.eup %2778 }
0x23ca   :  { %1810 = vrot.lane.b32.xlu1 %v2779_v1, %s2963_s29 }
0x243c   :  { %v1811_v3 = vpop.permute.xlu1 %1810 }
0x243d   :  { %v1813_v4 = vmul.f32 %v2777_v59, %v1811_v3  ;;  %v2146_v3 = vld [vmem:[#allocation8] sm:$0xff] }
0x243f   :  { %1815 = vrot.lane.b32.xlu0 %v1813_v4, %s2964_s17 }
0x24b1   :  { %v1816_v5 = vpop.permute.xlu0 %1815 }
0x24b2   :  { %2624 = vmatmul.mubr.msk.f32.vlgmr.msra.gmra.mxu1 %vm217_vm5, %v1816_v5 }
0x24b3   :  { %2638 = vmatpush3.msra.mxu1 %v3299_v8  ;;  %2645 = vmatprep.mubr.msk.f32.mxu1 %vm2962_vm4, %v2961_v13 }
0x24b4   :  { %2639 = vmatprep.subr.mxu1 %v2961_v13 }
0x24b5   :  { %2640 = vmatpush3.msra.mxu1 %v3308_v9 }
0x24b6   :  { %2641 = vmatprep.subr.mxu1 %v2961_v13 }
0x24b7   :  { %2642 = vmatpush3.msra.mxu1 %v3314_v10 }
0x24b8   :  { %2643 = vmatprep.subr.mxu1 %v2961_v13 }
0x24b9   :  { %2644 = vmatpush3.msra.mxu1 %v3326_v11  ;;  %v1901_v11 = vrot.slane %v1807_v0, 6  ;;  %v2147_v0 = vld [vmem:[#allocation8 + $0x8] sm:$0xff] }
0x2572   :  { %v1885_v51 = vpop.f32.mrf.mxu1 }
0x2573   :  { %v1890_v6 = vrot.slane %v1885_v51, 6 }
0x2574   :  { %v2625_v7 = vpop.f32.mrf.mxu1 }
0x2575   :  { %v1892_v8 = vadd.f32 %v1890_v6, %v3366_v27 }
0x2577   :  { %2780 = vtanh.f32 %v1892_v8  ;;  %v2320_v21 = vmul.f32 -1.442695, %v1892_v8 }
0x2579   :  { %2782 = vpow2.f32 %v2320_v21 }
0x2584   :  { %v2781_v31 = vpop.eup %2780 }
0x2585   :  { %1905 = vrot.lane.b32.xlu1 %v2781_v31, %s2963_s29 }
0x2586   :  { %v2783_v9 = vpop.eup %2782 }
0x2587   :  { %v1896_v12 = vadd.f32 1.0, %v2783_v9 }
0x2589   :  { %2784 = vrcp.f32 %v1896_v12 }
0x2596   :  { %v2785_v22 = vpop.eup %2784 }
0x2597   :  { %v1903_v15 = vmul.f32 %v2785_v22, %v1901_v11 }
0x25f7   :  { %v1906_v10 = vpop.permute.xlu1 %1905 }
0x25f8   :  { %v1908_v14 = vmul.f32 %v2785_v22, %v1906_v10 }
0x25fa   :  { %1910 = vrot.lane.b32.xlu0 %v1908_v14, %s2963_s29 }
0x266c   :  { %v1911_v23 = vpop.permute.xlu0 %1910 }
0x266d   :  { %v1913_v16 = vadd.f32 %v1911_v23, %v1903_v15 }
0x266f   :  { %2786 = vtanh.f32 %v1913_v16  ;;  %v2008_v41 = vrot.slane %v1913_v16, 6 }
0x267c   :  { %v2787_v17 = vpop.eup %2786 }
0x267d   :  { %1916 = vrot.lane.b32.xlu1 %v2787_v17, %s2963_s29 }
0x26ef   :  { %v1917_v24 = vpop.permute.xlu1 %1916 }
0x26f0   :  { %v1919_v18 = vmul.f32 %v2785_v22, %v1917_v24 }
0x26f2   :  { %v1921_v19 = vrot.slane %v1919_v18, 2 }
0x26f4   :  { %1922 = vrot.lane.b32.xlu0 %v1921_v19, %s2964_s17 }
0x2766   :  { %v1923_v20 = vpop.permute.xlu0 %1922 }
0x2767   :  { %2635 = vmatmul.mubr.msk.f32.vlgmr.msra.gmra.mxu0 %vm217_vm5, %v1923_v20 }
0x2768   :  { %2656 = vmatprep.mubr.msk.f32.mxu0 %vm2962_vm4, %v2961_v13 }
0x2827   :  { %v1992_v25 = vpop.f32.mrf.mxu0 }
0x2828   :  { %v1997_v26 = vrot.slane %v1992_v25, 4 }
0x2829   :  { %v2636_v28 = vpop.f32.mrf.mxu0 }
0x282a   :  { %v1999_v33 = vadd.f32 %v1997_v26, %v3366_v27 }
0x282c   :  { %2788 = vtanh.f32 %v1999_v33  ;;  %v2322_v35 = vmul.f32 -1.442695, %v1999_v33 }
0x282e   :  { %2790 = vpow2.f32 %v2322_v35 }
0x2839   :  { %v2789_v34 = vpop.eup %2788 }
0x283a   :  { %2012 = vrot.lane.b32.xlu1 %v2789_v34, %s2963_s29 }
0x283b   :  { %v2791_v36 = vpop.eup %2790 }
0x283c   :  { %v2003_v37 = vadd.f32 1.0, %v2791_v36 }
0x283e   :  { %2792 = vrcp.f32 %v2003_v37 }
0x284b   :  { %v2793_v38 = vpop.eup %2792 }
0x284c   :  { %v2010_v42 = vmul.f32 %v2793_v38, %v2008_v41 }
0x28ac   :  { %v2013_v39 = vpop.permute.xlu1 %2012 }
0x28ad   :  { %v2015_v40 = vmul.f32 %v2793_v38, %v2013_v39 }
0x28af   :  { %2017 = vrot.lane.b32.xlu0 %v2015_v40, %s2963_s29 }
0x2921   :  { %v2018_v43 = vpop.permute.xlu0 %2017 }
0x2922   :  { %v2020_v44 = vadd.f32 %v2018_v43, %v2010_v42 }
0x2924   :  { %2794 = vtanh.f32 %v2020_v44  ;;  %v2115_v60 = vrot.slane %v2020_v44, 6 }
0x2931   :  { %v2795_v45 = vpop.eup %2794 }
0x2932   :  { %2023 = vrot.lane.b32.xlu1 %v2795_v45, %s2963_s29 }
0x29a4   :  { %v2024_v46 = vpop.permute.xlu1 %2023 }
0x29a5   :  { %v2026_v47 = vmul.f32 %v2793_v38, %v2024_v46 }
0x29a7   :  { %v2028_v29 = vrot.slane %v2026_v47, 4 }
0x29a9   :  { %2029 = vrot.lane.b32.xlu0 %v2028_v29, %s2964_s17 }
0x2a1b   :  { %v2030_v48 = vpop.permute.xlu0 %2029 }
0x2a1c   :  { %2646 = vmatmul.mubr.msk.f32.vlgmr.msra.gmra.mxu1 %vm217_vm5, %v2030_v48 }
0x2adc   :  { %v2099_v49 = vpop.f32.mrf.mxu1 }
0x2add   :  { %v2104_v32 = vrot.slane %v2099_v49, 2 }
0x2ade   :  { %v2647_v50 = vpop.f32.mrf.mxu1 }
0x2adf   :  { %v2106_v52 = vadd.f32 %v2104_v32, %v3366_v27  ;;  %v2149_v27 = vld [vmem:[#allocation8 + $0x18] sm:$0xff] }
0x2ae0   :  { %2649 = vmatpush3.msra.mxu0 %v2149_v27 }
0x2ae1   :  { %2796 = vtanh.f32 %v2106_v52  ;;  %v2324_v54 = vmul.f32 -1.442695, %v2106_v52  ;;  %2650 = vmatprep.subr.mxu0 %v2961_v13 }
0x2ae2   :  { %2651 = vmatpush3.msra.mxu0 %v2148_v30 }
0x2ae3   :  { %2798 = vpow2.f32 %v2324_v54  ;;  %2652 = vmatprep.subr.mxu0 %v2961_v13 }
0x2ae4   :  { %2653 = vmatpush3.msra.mxu0 %v2147_v0 }
0x2ae5   :  { %2654 = vmatprep.subr.mxu0 %v2961_v13 }
0x2ae6   :  { %2655 = vmatpush3.msra.mxu0 %v2146_v3 }
0x2aee   :  { %v2797_v53 = vpop.eup %2796 }
0x2aef   :  { %2119 = vrot.lane.b32.xlu1 %v2797_v53, %s2963_s29 }
0x2af0   :  { %v2799_v55 = vpop.eup %2798 }
0x2af1   :  { %v2110_v56 = vadd.f32 1.0, %v2799_v55 }
0x2af3   :  { %2800 = vrcp.f32 %v2110_v56 }
0x2b00   :  { %v2801_v57 = vpop.eup %2800 }
0x2b01   :  { %v2117_v61 = vmul.f32 %v2801_v57, %v2115_v60 }
0x2b61   :  { %v2120_v58 = vpop.permute.xlu1 %2119 }
0x2b62   :  { %v2122_v59 = vmul.f32 %v2801_v57, %v2120_v58 }
0x2b64   :  { %2124 = vrot.lane.b32.xlu0 %v2122_v59, %s2963_s29 }
0x2bd6   :  { %v2125_v62 = vpop.permute.xlu0 %2124 }
0x2bd7   :  { %v2127_v63 = vadd.f32 %v2125_v62, %v2117_v61 }
0x2bd9   :  { %2802 = vtanh.f32 %v2127_v63 }
0x2be6   :  { %v2803_v1 = vpop.eup %2802 }
0x2be7   :  { %2130 = vrot.lane.b32.xlu1 %v2803_v1, %s2963_s29 }
0x2c59   :  { %v2131_v4 = vpop.permute.xlu1 %2130 }
0x2c5a   :  { %v2133_v5 = vmul.f32 %v2801_v57, %v2131_v4 }
0x2c5c   :  { %v2157_v51 = vrot.slane %v2133_v5, 6  ;;  %2135 = vrot.lane.b32.xlu1 %v2133_v5, %s2964_s17 }
0x2c5e   :  { %2158 = vrot.lane.b32.xlu0 %v2157_v51, %s2964_s17 }
0x2c60   :  { %2141 = vrot.lane.b32.xlu1 %v2127_v63, %s2965_s3 }
0x2c62   :  { %1182 = vrot.lane.b32.xlu0 %v3279_v2, %s2965_s3 }
0x2cce   :  { %v2136_v6 = vpop.permute.xlu1 %2135 }
0x2ccf   :  { %2139 = vst.msk [vmem:[#allocation12 - $0x4] sm:$0xc0] %vm740_vm8, %v2136_v6 }
0x2cd0   :  { %v2159_v7 = vpop.permute.xlu0 %2158 }
0x2cd1   :  { %2657 = vmatmul.mubr.msk.f32.vlgmr.msra.gmra.mxu0 %vm217_vm5, %v2159_v7 }
0x2cd2   :  { %v2142_v13 = vpop.permute.xlu1 %2141 }
0x2cd3   :  { %2145 = vst.msk [vmem:[#allocation14 - $0x4] sm:$0xc0] %vm740_vm8, %v2142_v13 }
0x2cd4   :  { %v1183_v8 = vpop.permute.xlu0 %1182 }
0x2cd5   :  { %1185 = vst.msk [vmem:[#allocation14 - $0x6] sm:$0xc0] %vm740_vm8, %v1183_v8 }
0x2cd6   :  { %2895 = shalt.err (!%p2892_p10)
}
0x2cd7   :  { %s2967_s30 = smov 2   ;;  %s2968_s0 = smov [#allocation14]  }
0x2cd8   :  { %2255 = dma.vmem_to_hbm [thread:$0]  %s2250_s6, 64, %s3503_s13, [#allocation13], %s2963_s29, %s2963_s29, %s2967_s30  }
0x2cd9   :  { %s2261_s8 = sshll.u32 %s2968_s0, 4  ;;  %s2262_s8 = int_to_ptr.vmem [resolvable:$true] %s2261_s8 }
0x2cda   :  { %s2904_s16 = scalar_lea.vmem %s2262_s8, 64  ;;  %p2909_p12 = scmp.lt.s32.totalorder %s2262_s8, %s2262_s8 }
0x2cdb   :  { %p2905_p11 = scmp.ne.s32.totalorder %s2262_s8, %s2904_s16  ;;  %p2910_p13 = scmp.lt.s32.totalorder %s2904_s16, %s2904_s16 }
0x2cdd   :  { %p2911_p0 = por %p2910_p13, %p2909_p12 }
0x2cdf   :  { %p2912_p1 = pnand %p2911_p0, %p2905_p11 }
0x2ce1   :  { %2915 = shalt.err (!%p2912_p1)
}
0x2ce2   :  { %2267 = dma.vmem_to_hbm [thread:$0]  %s2262_s8, 64, %s3504_s14, [#allocation13], %s2963_s29, %s2963_s29, %s2967_s30   ;;  %v2325_v2 = vld [vmem:[#allocation9] ss:$0 sm:$0xff]  ;;  %vm2232_vm10 = vcmask 517120  }
0x2ce3   :  { %s2969_s10 = smov [#allocation11]  }
0x2ce4   :  { %s2240_s20 = sshll.u32 %s2969_s10, 4  ;;  %s2241_s20 = int_to_ptr.vmem [resolvable:$true] %s2240_s20 }
0x2ce5   :  { %s2924_s13 = scalar_lea.vmem %s2241_s20, 32  ;;  %p2929_p3 = scmp.lt.s32.totalorder %s2241_s20, %s2241_s20 }
0x2ce6   :  { %p2925_p2 = scmp.ne.s32.totalorder %s2241_s20, %s2924_s13  ;;  %p2930_p4 = scmp.lt.s32.totalorder %s2924_s13, %s2924_s13 }
0x2ce8   :  { %p2931_p5 = por %p2930_p4, %p2929_p3 }
0x2cea   :  { %p2932_p6 = pnand %p2931_p5, %p2925_p2 }
0x2d91   :  { %v2228_v31 = vpop.f32.mrf.mxu0 }
0x2d92   :  { %v2229_v21 = vadd.f32 %v2325_v2, %v2228_v31 }
0x2d93   :  { %v2658_v9 = vpop.f32.mrf.mxu0 }
0x2d94   :  { %2233 = vst.msk [vmem:[#allocation11] sm:$0x3] %vm2232_vm10, %v2229_v21 }
0x2d95   :  { %2935 = shalt.err (!%p2932_p6)
}
0x2d96   :  { %2243 = dma.vmem_to_hbm [thread:$0]  %s2241_s20, 32, %s3502_s12, [#allocation5]  }
0x2d97   :  { %2950 = dma.done.wait [#allocation5], 32  }
0x2d98   :  { %2951 = vsyncadd [#allocation5], 4294967264 }
0x2d99   :  { %2952 = dma.done.wait [#allocation13], 128  }
0x2d9a   :  { %2953 = vsyncadd [#allocation13], 4294967168 }
0x2d9b   :  { %2277 = vsyncpa [#allocation4], 1 }
0x2d9c   :  { %2278 = vsyncpa [#allocation7], 1 }
0x2d9d   :  { %2279 = vsyncpa [#allocation10], 1 }
0x2d9e   :  { %2280 = vsyncpa [#allocation5], 1 }
0x2d9f   :  { %2281 = vsyncpa [#allocation13], 1 }

</bundles_post_ra>
